<compile_context>
chip_gen: v7x
topology: tpu7x:2x2x1
jax: 0.10.0
libtpu: 0.0.40
codegen_flags: <defaults>
</compile_context>

<pallas_src>
import functools

import jax
import jax.numpy as jnp
from jax.experimental import pallas as pl
from jax.experimental.pallas import tpu as pltpu

_LANE = 128          # lane width: last-dim padding target for the output slab
_NEG_BIG = -1e30     # "minus infinity" for padded logit lanes (finite -> no NaN)
_MAX_TILE = 2048     # rows per grid step; ~4 MiB/step of double-buffered VMEM


def _ceil_to(x, m):
    return ((x + m - 1) // m) * m


def _num_tensorcores():
    """Best-effort TensorCores-per-device (v7x = 2, v5e/v6e = 1)."""
    try:
        kind = jax.devices()[0].device_kind.lower()
    except Exception:
        return 1
    return 2 if "v7" in kind else 1


def _choose_tiling(batch, num_cores, max_tile=_MAX_TILE):
    """grid=(1,) on single-TC chips when the batch fits; even grid on v7x."""
    if num_cores <= 1:
        grid = max(1, pl.cdiv(batch, max_tile))
    else:
        grid = num_cores * max(1, pl.cdiv(batch, num_cores * max_tile))
    batch_tile = _ceil_to(pl.cdiv(batch, grid), 8)   # MXU M only needs %8
    return batch_tile, grid


def _mlp_kernel(num_hidden, *refs):
    """Fused MLP forward: (Linear+ReLU) stack, predict Linear, softmax.

    refs layout:
      refs[0]                  : x tile   (TB, input_size)          f32
      refs[1 : 1+2*num_hidden] : (W, b) pairs, hidden layers        f32
      refs[-3:-1]              : (Wp, bp) predict layer, lane-padded f32
      refs[-1]                 : out tile (TB, out_lanes)           f32
    """
    x_ref = refs[0]
    param_refs = refs[1:-1]
    out_ref = refs[-1]

    # f32 end-to-end: the MXU is nowhere near the binding slot at width=32,
    # and this matches the PyTorch f32 semantics exactly.
    h = x_ref[...]
    for l in range(num_hidden):
        w = param_refs[2 * l][...]                       # (in, width)
        b = param_refs[2 * l + 1][...]                   # (1, width)
        h = jnp.maximum(jnp.dot(h, w, preferred_element_type=jnp.float32) + b, 0.0)

    wp = param_refs[-2][...]                             # (width, out_lanes)
    bp = param_refs[-1][...]                             # (1, out_lanes); padded lanes = -1e30
    logits = jnp.dot(h, wp, preferred_element_type=jnp.float32) + bp

    # Numerically-stable softmax over the lane-padded last dim.  Padded lanes
    # hold -1e30, so exp() underflows to exactly 0 and they add no mass.
    m = jnp.max(logits, axis=-1, keepdims=True)
    e = jnp.exp(logits - m)
    denom = jnp.sum(e, axis=-1, keepdims=True)
    out_ref[...] = (e / denom).astype(out_ref.dtype)     # exact normalization


def prepare_params(params, output_size):
    """One-time prep: flatten (W, b) pairs, lane-pad the predict layer to 128.

    Call once at init and reuse the result for every forward call.
    """
    flat = []
    for w, b in params[:-1]:
        flat.append(w.astype(jnp.float32))
        flat.append(b.reshape(1, -1).astype(jnp.float32))

    wp, bp = params[-1]
    width = wp.shape[0]
    out_lanes = _ceil_to(output_size, _LANE)
    wp_pad = jnp.zeros((width, out_lanes), jnp.float32).at[:, :output_size].set(wp)
    bp_pad = jnp.full((1, out_lanes), _NEG_BIG, jnp.float32).at[0, :output_size].set(
        bp.reshape(-1))
    flat.append(wp_pad)
    flat.append(bp_pad)
    return tuple(flat)


@functools.partial(jax.jit, static_argnames=("output_size", "num_cores"))
def mlp_classifier_forward(x, flat_params, *, output_size, num_cores=1):
    """x: (B, input_size) f32.  flat_params: output of prepare_params()."""
    B, in_features = x.shape
    num_hidden = (len(flat_params) - 2) // 2
    out_lanes = flat_params[-1].shape[-1]

    batch_tile, grid = _choose_tiling(B, num_cores)
    B_pad = batch_tile * grid
    if B_pad != B:
        x = jnp.pad(x, ((0, B_pad - B), (0, 0)))   # fused under jit

    x_spec = pl.BlockSpec((batch_tile, in_features), lambda i: (i, 0))
    # Whole-array blocks with constant index maps: block-invariant across the
    # grid, so the pipeline keeps the weights/biases resident in VMEM.
    param_specs = [pl.BlockSpec(p.shape, lambda i: (0, 0)) for p in flat_params]
    out_spec = pl.BlockSpec((batch_tile, out_lanes), lambda i: (i, 0))

    out_padded = pl.pallas_call(
        functools.partial(_mlp_kernel, num_hidden),
        out_shape=jax.ShapeDtypeStruct((B_pad, out_lanes), jnp.float32),
        grid_spec=pltpu.PrefetchScalarGridSpec(
            num_scalar_prefetch=0,
            grid=(grid,),
            in_specs=[x_spec] + list(param_specs),
            out_specs=out_spec,
        ),
        compiler_params=pltpu.CompilerParams(
            dimension_semantics=("parallel",)),
    )(x, *flat_params)

    # Slice fuses with the consumer under the same jit.
    return out_padded[:B, :output_size]


def init_params(key, input_size, output_size, network_width, network_layers):
    """torch.nn.Linear-style init: U(-k, k), k = 1/sqrt(fan_in). Stored f32."""
    sizes = [(input_size, network_width)]
    sizes += [(network_width, network_width)] * (network_layers - 1)
    sizes += [(network_width, output_size)]

    params = []
    for fan_in, fan_out in sizes:
        key, kw, kb = jax.random.split(key, 3)
        k = 1.0 / jnp.sqrt(jnp.float32(fan_in))
        w = jax.random.uniform(kw, (fan_in, fan_out), jnp.float32, -k, k)
        b = jax.random.uniform(kb, (1, fan_out), jnp.float32, -k, k)
        params.append((w, b))
    return params


def reference_forward_f32(x, params):
    """Pure-JAX f32 reference of the PyTorch forward (torch semantics)."""
    h = x
    for w, b in params[:-1]:
        h = jnp.maximum(h @ w + b, 0.0)
    wp, bp = params[-1]
    return jax.nn.softmax(h @ wp + bp, axis=-1)


if __name__ == "__main__":
    # Shapes consistent with the module: 4 input features (x, y, beta, noise as
    # in draw_output), 3 hidden layers of width 32, 6 output classes.
    INPUT_SIZE = 4
    OUTPUT_SIZE = 6
    NETWORK_WIDTH = 32
    NETWORK_LAYERS = 3
    BATCH = 512

    key = jax.random.PRNGKey(0)
    key, kx = jax.random.split(key)
    x = jax.random.normal(kx, (BATCH, INPUT_SIZE), jnp.float32)

    params = init_params(key, INPUT_SIZE, OUTPUT_SIZE, NETWORK_WIDTH, NETWORK_LAYERS)
    flat_params = jax.tree_util.tree_map(jax.block_until_ready,
                                         prepare_params(params, OUTPUT_SIZE))
    num_cores = _num_tensorcores()   # v5e/v6e -> grid=(1,); v7x -> even grid

    out = mlp_classifier_forward(
        x, flat_params, output_size=OUTPUT_SIZE, num_cores=num_cores)
    out = jax.block_until_ready(out)

    assert out.shape == (BATCH, OUTPUT_SIZE)
    # Exact softmax normalization: rows sum to 1 up to f32 rounding.
    assert jnp.allclose(jnp.sum(out, axis=-1), 1.0, atol=1e-5)
    # Parity with the f32 torch-semantics reference (f32 kernel path).
    ref_f32 = reference_forward_f32(x, params)
    assert jnp.allclose(out, ref_f32, atol=1e-2, rtol=1e-2)
    assert jnp.array_equal(jnp.argmax(out, axis=-1), jnp.argmax(ref_f32, axis=-1))

    print("KERNEL_OK")
</pallas_src>

<mosaic_0001>
module attributes {stable_mosaic.version = 11 : i64} {
  func.func @_mlp_kernel(%arg0: i32, %arg1: memref<512x4xf32, #tpu.memory_space<vmem>>, %arg2: memref<4x32xf32, #tpu.memory_space<vmem>>, %arg3: memref<1x32xf32, #tpu.memory_space<vmem>>, %arg4: memref<32x32xf32, #tpu.memory_space<vmem>>, %arg5: memref<1x32xf32, #tpu.memory_space<vmem>>, %arg6: memref<32x32xf32, #tpu.memory_space<vmem>>, %arg7: memref<1x32xf32, #tpu.memory_space<vmem>>, %arg8: memref<32x128xf32, #tpu.memory_space<vmem>>, %arg9: memref<1x128xf32, #tpu.memory_space<vmem>>, %arg10: memref<512x128xf32, #tpu.memory_space<vmem>>) attributes {dimension_semantics = [#tpu.dimension_semantics<parallel>], iteration_bounds = array<i64: 1>, scalar_prefetch = 0 : i64, scratch_operands = 0 : i64, tpu.core_type = #tpu.core_type<tc>, window_params = [{transform_indices = @transform_0, window_bounds = array<i64: 512, 4>}, {pipeline_mode = #tpu.pipeline_mode<synchronous>, transform_indices = @transform_1, window_bounds = array<i64: 4, 32>}, {pipeline_mode = #tpu.pipeline_mode<synchronous>, transform_indices = @transform_2, window_bounds = array<i64: 1, 32>}, {pipeline_mode = #tpu.pipeline_mode<synchronous>, transform_indices = @transform_3, window_bounds = array<i64: 32, 32>}, {pipeline_mode = #tpu.pipeline_mode<synchronous>, transform_indices = @transform_4, window_bounds = array<i64: 1, 32>}, {pipeline_mode = #tpu.pipeline_mode<synchronous>, transform_indices = @transform_5, window_bounds = array<i64: 32, 32>}, {pipeline_mode = #tpu.pipeline_mode<synchronous>, transform_indices = @transform_6, window_bounds = array<i64: 1, 32>}, {pipeline_mode = #tpu.pipeline_mode<synchronous>, transform_indices = @transform_7, window_bounds = array<i64: 32, 128>}, {pipeline_mode = #tpu.pipeline_mode<synchronous>, transform_indices = @transform_8, window_bounds = array<i64: 1, 128>}, {transform_indices = @transform_9, window_bounds = array<i64: 512, 128>}]} {
    %c0 = arith.constant 0 : index
    %c0_0 = arith.constant 0 : index
    %0 = vector.load %arg1[%c0, %c0_0] : memref<512x4xf32, #tpu.memory_space<vmem>>, vector<512x4xf32>
    %c0_1 = arith.constant 0 : index
    %c0_2 = arith.constant 0 : index
    %1 = vector.load %arg2[%c0_1, %c0_2] : memref<4x32xf32, #tpu.memory_space<vmem>>, vector<4x32xf32>
    %c0_3 = arith.constant 0 : index
    %c0_4 = arith.constant 0 : index
    %2 = vector.load %arg3[%c0_3, %c0_4] : memref<1x32xf32, #tpu.memory_space<vmem>>, vector<1x32xf32>
    %cst = arith.constant dense<0.000000e+00> : vector<512x32xf32>
    %3 = tpu.matmul %0, %1, %cst {dimension_numbers = #tpu.dot_dimension_numbers<[1], [0], [0], [1], [0, 0, 1, 1], [], []>} : vector<512x4xf32>, vector<4x32xf32>, vector<512x32xf32> -> vector<512x32xf32>
    %4 = vector.broadcast %2 : vector<1x32xf32> to vector<512x32xf32>
    %5 = arith.addf %3, %4 : vector<512x32xf32>
    %cst_5 = arith.constant 0.000000e+00 : f32
    %6 = vector.broadcast %cst_5 : f32 to vector<512x32xf32>
    %7 = arith.maximumf %5, %6 : vector<512x32xf32>
    %c0_6 = arith.constant 0 : index
    %c0_7 = arith.constant 0 : index
    %8 = vector.load %arg4[%c0_6, %c0_7] : memref<32x32xf32, #tpu.memory_space<vmem>>, vector<32x32xf32>
    %c0_8 = arith.constant 0 : index
    %c0_9 = arith.constant 0 : index
    %9 = vector.load %arg5[%c0_8, %c0_9] : memref<1x32xf32, #tpu.memory_space<vmem>>, vector<1x32xf32>
    %cst_10 = arith.constant dense<0.000000e+00> : vector<512x32xf32>
    %10 = tpu.matmul %7, %8, %cst_10 {dimension_numbers = #tpu.dot_dimension_numbers<[1], [0], [0], [1], [0, 0, 1, 1], [], []>} : vector<512x32xf32>, vector<32x32xf32>, vector<512x32xf32> -> vector<512x32xf32>
    %11 = vector.broadcast %9 : vector<1x32xf32> to vector<512x32xf32>
    %12 = arith.addf %10, %11 : vector<512x32xf32>
    %cst_11 = arith.constant 0.000000e+00 : f32
    %13 = vector.broadcast %cst_11 : f32 to vector<512x32xf32>
    %14 = arith.maximumf %12, %13 : vector<512x32xf32>
    %c0_12 = arith.constant 0 : index
    %c0_13 = arith.constant 0 : index
    %15 = vector.load %arg6[%c0_12, %c0_13] : memref<32x32xf32, #tpu.memory_space<vmem>>, vector<32x32xf32>
    %c0_14 = arith.constant 0 : index
    %c0_15 = arith.constant 0 : index
    %16 = vector.load %arg7[%c0_14, %c0_15] : memref<1x32xf32, #tpu.memory_space<vmem>>, vector<1x32xf32>
    %cst_16 = arith.constant dense<0.000000e+00> : vector<512x32xf32>
    %17 = tpu.matmul %14, %15, %cst_16 {dimension_numbers = #tpu.dot_dimension_numbers<[1], [0], [0], [1], [0, 0, 1, 1], [], []>} : vector<512x32xf32>, vector<32x32xf32>, vector<512x32xf32> -> vector<512x32xf32>
    %18 = vector.broadcast %16 : vector<1x32xf32> to vector<512x32xf32>
    %19 = arith.addf %17, %18 : vector<512x32xf32>
    %cst_17 = arith.constant 0.000000e+00 : f32
    %20 = vector.broadcast %cst_17 : f32 to vector<512x32xf32>
    %21 = arith.maximumf %19, %20 : vector<512x32xf32>
    %c0_18 = arith.constant 0 : index
    %c0_19 = arith.constant 0 : index
    %22 = vector.load %arg8[%c0_18, %c0_19] : memref<32x128xf32, #tpu.memory_space<vmem>>, vector<32x128xf32>
    %c0_20 = arith.constant 0 : index
    %c0_21 = arith.constant 0 : index
    %23 = vector.load %arg9[%c0_20, %c0_21] : memref<1x128xf32, #tpu.memory_space<vmem>>, vector<1x128xf32>
    %cst_22 = arith.constant dense<0.000000e+00> : vector<512x128xf32>
    %24 = tpu.matmul %21, %22, %cst_22 {dimension_numbers = #tpu.dot_dimension_numbers<[1], [0], [0], [1], [0, 0, 1, 1], [], []>} : vector<512x32xf32>, vector<32x128xf32>, vector<512x128xf32> -> vector<512x128xf32>
    %25 = vector.broadcast %23 : vector<1x128xf32> to vector<512x128xf32>
    %26 = arith.addf %24, %25 : vector<512x128xf32>
    %cst_23 = arith.constant dense<0xFF800000> : vector<512xf32>
    %27 = vector.multi_reduction <maximumf>, %26, %cst_23 [1] : vector<512x128xf32> to vector<512xf32>
    %28 = vector.shape_cast %27 : vector<512xf32> to vector<512x1xf32>
    %29 = vector.broadcast %28 : vector<512x1xf32> to vector<512x128xf32>
    %30 = arith.subf %26, %29 : vector<512x128xf32>
    %31 = math.exp %30 : vector<512x128xf32>
    %cst_24 = arith.constant dense<0.000000e+00> : vector<512xf32>
    %32 = vector.multi_reduction <add>, %31, %cst_24 [1] : vector<512x128xf32> to vector<512xf32>
    %33 = vector.shape_cast %32 : vector<512xf32> to vector<512x1xf32>
    %34 = vector.broadcast %33 : vector<512x1xf32> to vector<512x128xf32>
    %35 = arith.divf %31, %34 : vector<512x128xf32>
    %c0_25 = arith.constant 0 : index
    %c0_26 = arith.constant 0 : index
    %36 = vector.load %arg10[%c0_25, %c0_26] : memref<512x128xf32, #tpu.memory_space<vmem>>, vector<512x128xf32>
    tpu.vector_store %arg10[%c0_25, %c0_26], %35 {strides = array<i32>} : memref<512x128xf32, #tpu.memory_space<vmem>>, vector<512x128xf32>,
    return
  }
  func.func @transform_0(%arg0: i32) -> (i32, i32) {
    %c0_i32 = arith.constant 0 : i32
    %c0_i32_0 = arith.constant 0 : i32
    return %arg0, %c0_i32 : i32, i32
  }
  func.func @transform_1(%arg0: i32) -> (i32, i32) {
    %c0_i32 = arith.constant 0 : i32
    %c0_i32_0 = arith.constant 0 : i32
    %c0_i32_1 = arith.constant 0 : i32
    return %c0_i32, %c0_i32_0 : i32, i32
  }
  func.func @transform_2(%arg0: i32) -> (i32, i32) {
    %c0_i32 = arith.constant 0 : i32
    %c0_i32_0 = arith.constant 0 : i32
    %c0_i32_1 = arith.constant 0 : i32
    return %c0_i32, %c0_i32_0 : i32, i32
  }
  func.func @transform_3(%arg0: i32) -> (i32, i32) {
    %c0_i32 = arith.constant 0 : i32
    %c0_i32_0 = arith.constant 0 : i32
    %c0_i32_1 = arith.constant 0 : i32
    return %c0_i32, %c0_i32_0 : i32, i32
  }
  func.func @transform_4(%arg0: i32) -> (i32, i32) {
    %c0_i32 = arith.constant 0 : i32
    %c0_i32_0 = arith.constant 0 : i32
    %c0_i32_1 = arith.constant 0 : i32
    return %c0_i32, %c0_i32_0 : i32, i32
  }
  func.func @transform_5(%arg0: i32) -> (i32, i32) {
    %c0_i32 = arith.constant 0 : i32
    %c0_i32_0 = arith.constant 0 : i32
    %c0_i32_1 = arith.constant 0 : i32
    return %c0_i32, %c0_i32_0 : i32, i32
  }
  func.func @transform_6(%arg0: i32) -> (i32, i32) {
    %c0_i32 = arith.constant 0 : i32
    %c0_i32_0 = arith.constant 0 : i32
    %c0_i32_1 = arith.constant 0 : i32
    return %c0_i32, %c0_i32_0 : i32, i32
  }
  func.func @transform_7(%arg0: i32) -> (i32, i32) {
    %c0_i32 = arith.constant 0 : i32
    %c0_i32_0 = arith.constant 0 : i32
    %c0_i32_1 = arith.constant 0 : i32
    return %c0_i32, %c0_i32_0 : i32, i32
  }
  func.func @transform_8(%arg0: i32) -> (i32, i32) {
    %c0_i32 = arith.constant 0 : i32
    %c0_i32_0 = arith.constant 0 : i32
    %c0_i32_1 = arith.constant 0 : i32
    return %c0_i32, %c0_i32_0 : i32, i32
  }
  func.func @transform_9(%arg0: i32) -> (i32, i32) {
    %c0_i32 = arith.constant 0 : i32
    %c0_i32_0 = arith.constant 0 : i32
    return %arg0, %c0_i32 : i32, i32
  }
}

</mosaic_0001>

<bundles_post_ra>
// kernel: mlp_classifier_forward.1
= control target key start
LH: loop header
LB: loop body
LE: loop exit
PB: predicated region body
PF: predicated region fallthrough
CT: control target
= control target key end

     0   :  { %vm297_vm0 = vcmask 1043456   ;;  %vm104_vm1 = vcmask 31744   ;;  %vm761_vm2 = vcmask 261120   ;;  %s6024_s1 = inlined_call_operand.vmem [shape: f32[4,32], index: 1, kind: input, shape index: {}]   ;;  %s6025_s0 = inlined_call_operand.vmem [shape: f32[512,4], index: 0, kind: input, shape index: {}]   ;;  %s6026_s3 = inlined_call_operand.vmem [shape: f32[32,32], index: 3, kind: input, shape index: {}]   ;;  %s6027_s5 = inlined_call_operand.vmem [shape: f32[32,32], index: 5, kind: input, shape index: {}]   ;;  %s6028_s2 = inlined_call_operand.vmem [shape: f32[1,32], index: 2, kind: input, shape index: {}]   ;;  %s6029_s7 = inlined_call_operand.vmem [shape: f32[32,128], index: 7, kind: input, shape index: {}]   ;;  %s6030_s4 = inlined_call_operand.vmem [shape: f32[1,32], index: 4, kind: input, shape index: {}]   ;;  %s6031_s6 = inlined_call_operand.vmem [shape: f32[1,32], index: 6, kind: input, shape index: {}]   ;;  %s6032_s8 = inlined_call_operand.vmem [shape: f32[1,128], index: 8, kind: input, shape index: {}]   ;;  %s6033_s9 = inlined_call_operand.vmem [shape: f32[512,128], index: 9, kind: output, shape index: {}]  }
   0x1   :  { %v96_v0 = vld [vmem:[%s6024_s1] sm:$0xf]  ;;  %v33_v2 = vld [vmem:[%s6025_s0 + $0x8] sm:$0xff]  ;;  %v34_v3 = vld [vmem:[%s6025_s0 + $0x10] sm:$0xff] }
   0x2   :  { %v32_v1 = vld [vmem:[%s6025_s0] sm:$0xff]  ;;  %3817 = vmatprep.subr.msk.mxu0 %vm297_vm0, %v96_v0  ;;  %v35_v4 = vld [vmem:[%s6025_s0 + $0x18] sm:$0xff]  ;;  %v37_v6 = vld [vmem:[%s6025_s0 + $0x28] sm:$0xff] }
   0x3   :  { %3819 = vmatprep.mubr.msk.f32.mxu0 %vm104_vm1, %v32_v1  ;;  %3818 = vmatpush3.msk.msra.mxu0 %vm297_vm0, %v96_v0  ;;  %v36_v5 = vld [vmem:[%s6025_s0 + $0x20] sm:$0xff]  ;;  %v38_v7 = vld [vmem:[%s6025_s0 + $0x30] sm:$0xff]  ;;  %v39_v8 = vld [vmem:[%s6025_s0 + $0x38] sm:$0xff] }
   0x4   :  { %3820 = vmatmul.mubr.msk.f32.vlgmr.msra.gmra.mrb[0].mxu0 %vm104_vm1, %v33_v2  ;;  %v40_v9 = vld [vmem:[%s6025_s0 + $0x40] sm:$0xff]  ;;  %v41_v10 = vld [vmem:[%s6025_s0 + $0x48] sm:$0xff]  ;;  %v42_v11 = vld [vmem:[%s6025_s0 + $0x50] sm:$0xff] }
   0x5   :  { %3822 = vmatprep.mubr.msk.f32.mxu0 %vm104_vm1, %v34_v3  ;;  %v43_v12 = vld [vmem:[%s6025_s0 + $0x58] sm:$0xff]  ;;  %v44_v13 = vld [vmem:[%s6025_s0 + $0x60] sm:$0xff]  ;;  %v751_v15 = vld [vmem:[%s6026_s3 + $0x8] sm:$0xff] }
   0x6   :  { %v750_v14 = vld [vmem:[%s6026_s3] sm:$0xff]  ;;  %v45_v17 = vld [vmem:[%s6025_s0 + $0x68] sm:$0xff]  ;;  %v46_v18 = vld [vmem:[%s6025_s0 + $0x70] sm:$0xff] }
   0x7   :  { %v4227_v16 = vpack.c.bf16 %v751_v15, %v750_v14  ;;  %v47_v19 = vld [vmem:[%s6025_s0 + $0x78] sm:$0xff]  ;;  %v48_v20 = vld [vmem:[%s6025_s0 + $0x80] sm:$0xff]  ;;  %v49_v21 = vld [vmem:[%s6025_s0 + $0x88] sm:$0xff] }
   0x8   :  { %3823 = vmatmul.mubr.msk.f32.gmra.mrb[2].mxu0 %vm104_vm1, %v35_v4  ;;  %v50_v22 = vld [vmem:[%s6025_s0 + $0x90] sm:$0xff]  ;;  %v51_v23 = vld [vmem:[%s6025_s0 + $0x98] sm:$0xff]  ;;  %v52_v24 = vld [vmem:[%s6025_s0 + $0xa0] sm:$0xff] }
   0x9   :  { %3825 = vmatprep.mubr.msk.f32.mxu0 %vm104_vm1, %v36_v5  ;;  %4228 = vmatprep.subr.bf16.mxu1 %v4227_v16  ;;  %v53_v25 = vld [vmem:[%s6025_s0 + $0xa8] sm:$0xff]  ;;  %v54_v26 = vld [vmem:[%s6025_s0 + $0xb0] sm:$0xff]  ;;  %v55_v27 = vld [vmem:[%s6025_s0 + $0xb8] sm:$0xff] }
   0xa   :  { %4230 = vmatpush3.bf16.msra.mxu1 %v4227_v16  ;;  %v56_v28 = vld [vmem:[%s6025_s0 + $0xc0] sm:$0xff]  ;;  %v57_v29 = vld [vmem:[%s6025_s0 + $0xc8] sm:$0xff]  ;;  %v58_v30 = vld [vmem:[%s6025_s0 + $0xd0] sm:$0xff] }
   0xb   :  { %v59_v31 = vld [vmem:[%s6025_s0 + $0xd8] sm:$0xff]  ;;  %v60_v32 = vld [vmem:[%s6025_s0 + $0xe0] sm:$0xff]  ;;  %v61_v33 = vld [vmem:[%s6025_s0 + $0xe8] sm:$0xff] }
   0xc   :  { %3826 = vmatmul.mubr.msk.f32.gmra.mrb[4].mxu0 %vm104_vm1, %v37_v6  ;;  %v62_v34 = vld [vmem:[%s6025_s0 + $0xf0] sm:$0xff]  ;;  %v63_v35 = vld [vmem:[%s6025_s0 + $0xf8] sm:$0xff]  ;;  %v64_v36 = vld [vmem:[%s6025_s0 + $0x100] sm:$0xff] }
   0xd   :  { %3828 = vmatprep.mubr.msk.f32.mxu0 %vm104_vm1, %v38_v7  ;;  %v65_v37 = vld [vmem:[%s6025_s0 + $0x108] sm:$0xff]  ;;  %v66_v38 = vld [vmem:[%s6025_s0 + $0x110] sm:$0xff]  ;;  %v67_v39 = vld [vmem:[%s6025_s0 + $0x118] sm:$0xff] }
   0xe   :  { %v68_v40 = vld [vmem:[%s6025_s0 + $0x120] sm:$0xff]  ;;  %v69_v41 = vld [vmem:[%s6025_s0 + $0x128] sm:$0xff]  ;;  %v70_v42 = vld [vmem:[%s6025_s0 + $0x130] sm:$0xff] }
   0xf   :  { %v71_v43 = vld [vmem:[%s6025_s0 + $0x138] sm:$0xff]  ;;  %v72_v44 = vld [vmem:[%s6025_s0 + $0x140] sm:$0xff]  ;;  %v73_v45 = vld [vmem:[%s6025_s0 + $0x148] sm:$0xff] }
  0x10   :  { %3829 = vmatmul.mubr.msk.f32.gmra.mrb[6].mxu0 %vm104_vm1, %v39_v8  ;;  %v74_v46 = vld [vmem:[%s6025_s0 + $0x150] sm:$0xff]  ;;  %v75_v47 = vld [vmem:[%s6025_s0 + $0x158] sm:$0xff]  ;;  %v76_v48 = vld [vmem:[%s6025_s0 + $0x160] sm:$0xff] }
  0x11   :  { %3831 = vmatprep.mubr.msk.f32.mxu0 %vm104_vm1, %v40_v9  ;;  %v752_v49 = vld [vmem:[%s6026_s3 + $0x10] sm:$0xff]  ;;  %v753_v50 = vld [vmem:[%s6026_s3 + $0x18] sm:$0xff]  ;;  %v77_v52 = vld [vmem:[%s6025_s0 + $0x168] sm:$0xff] }
  0x12   :  { %v4231_v51 = vpack.c.bf16 %v753_v50, %v752_v49  ;;  %v78_v53 = vld [vmem:[%s6025_s0 + $0x170] sm:$0xff]  ;;  %v79_v54 = vld [vmem:[%s6025_s0 + $0x178] sm:$0xff]  ;;  %v80_v55 = vld [vmem:[%s6025_s0 + $0x180] sm:$0xff] }
  0x13   :  { %v81_v56 = vld [vmem:[%s6025_s0 + $0x188] sm:$0xff]  ;;  %v82_v57 = vld [vmem:[%s6025_s0 + $0x190] sm:$0xff]  ;;  %v83_v58 = vld [vmem:[%s6025_s0 + $0x198] sm:$0xff] }
  0x14   :  { %3832 = vmatmul.mubr.msk.f32.gmra.mrb[8].mxu0 %vm104_vm1, %v41_v10  ;;  %4232 = vmatprep.subr.bf16.mxu1 %v4231_v51  ;;  %v84_v59 = vld [vmem:[%s6025_s0 + $0x1a0] sm:$0xff]  ;;  %v85_v60 = vld [vmem:[%s6025_s0 + $0x1a8] sm:$0xff]  ;;  %v86_v61 = vld [vmem:[%s6025_s0 + $0x1b0] sm:$0xff] }
  0x15   :  { %3834 = vmatprep.mubr.msk.f32.mxu0 %vm104_vm1, %v42_v11  ;;  %4234 = vmatpush3.bf16.msra.mxu1 %v4231_v51  ;;  %v87_v62 = vld [vmem:[%s6025_s0 + $0x1b8] sm:$0xff]  ;;  %v88_v63 = vld [vmem:[%s6025_s0 + $0x1c0] sm:$0xff]  ;;  %v89_v0 = vld [vmem:[%s6025_s0 + $0x1c8] sm:$0xff] }
  0x16   :  { %v90_v1 = vld [vmem:[%s6025_s0 + $0x1d0] sm:$0xff]  ;;  %v91_v2 = vld [vmem:[%s6025_s0 + $0x1d8] sm:$0xff]  ;;  %v92_v3 = vld [vmem:[%s6025_s0 + $0x1e0] sm:$0xff] }
  0x17   :  { %v93_v4 = vld [vmem:[%s6025_s0 + $0x1e8] sm:$0xff]  ;;  %v94_v5 = vld [vmem:[%s6025_s0 + $0x1f0] sm:$0xff]  ;;  %v95_v6 = vld [vmem:[%s6025_s0 + $0x1f8] sm:$0xff] }
  0x18   :  { %3835 = vmatmul.mubr.msk.f32.gmra.mrb[10].mxu0 %vm104_vm1, %v43_v12  ;;  %v1403_v7 = vld [vmem:[%s6027_s5] sm:$0xff]  ;;  %v1404_v8 = vld [vmem:[%s6027_s5 + $0x8] sm:$0xff]  ;;  %v1405_v15 = vld [vmem:[%s6027_s5 + $0x10] sm:$0xff] }
  0x19   :  { %3837 = vmatprep.mubr.msk.f32.mxu0 %vm104_vm1, %v44_v13  ;;  %v4235_v9 = vpack.c.bf16 %v1404_v8, %v1403_v7  ;;  %v4837_v10 = vld [vmem:[%s6028_s2] ss:$0 sm:$0xff]  ;;  %v1406_v16 = vld [vmem:[%s6027_s5 + $0x18] sm:$0xff] }
  0x1b   :  { %4236 = vmatprep.subr.bf16.mxu0 %v4235_v9 }
  0x1c   :  { %3838 = vmatmul.mubr.msk.f32.gmra.mrb[12].mxu0 %vm104_vm1, %v45_v17 }
  0x1d   :  { %3840 = vmatprep.mubr.msk.f32.mxu0 %vm104_vm1, %v46_v18  ;;  %4238 = vmatpush3.bf16.msra.mxu0 %v4235_v9 }
  0x20   :  { %3841 = vmatmul.mubr.msk.f32.gmra.mrb[14].mxu0 %vm104_vm1, %v47_v19  ;;  %v4239_v19 = vpack.c.bf16 %v1406_v16, %v1405_v15 }
  0x21   :  { %3843 = vmatprep.mubr.msk.f32.mxu0 %vm104_vm1, %v48_v20 }
  0x22   :  { %4240 = vmatprep.subr.bf16.mxu0 %v4239_v19 }
  0x23   :  { %4242 = vmatpush3.bf16.msra.mxu0 %v4239_v19 }
  0x24   :  { %3844 = vmatmul.mubr.msk.f32.gmra.mrb[16].mxu0 %vm104_vm1, %v49_v21 }
  0x25   :  { %3846 = vmatprep.mubr.msk.f32.mxu0 %vm104_vm1, %v50_v22 }
  0x28   :  { %3847 = vmatmul.mubr.msk.f32.gmra.mrb[18].mxu0 %vm104_vm1, %v51_v23 }
  0x29   :  { %3849 = vmatprep.mubr.msk.f32.mxu0 %vm104_vm1, %v52_v24 }
  0x2c   :  { %3850 = vmatmul.mubr.msk.f32.gmra.mrb[20].mxu0 %vm104_vm1, %v53_v25 }
  0x2d   :  { %3852 = vmatprep.mubr.msk.f32.mxu0 %vm104_vm1, %v54_v26 }
  0x30   :  { %3853 = vmatmul.mubr.msk.f32.gmra.mrb[22].mxu0 %vm104_vm1, %v55_v27 }
  0x31   :  { %3855 = vmatprep.mubr.msk.f32.mxu0 %vm104_vm1, %v56_v28 }
  0x34   :  { %3856 = vmatmul.mubr.msk.f32.gmra.mrb[24].mxu0 %vm104_vm1, %v57_v29 }
  0x35   :  { %3858 = vmatprep.mubr.msk.f32.mxu0 %vm104_vm1, %v58_v30 }
  0x38   :  { %3859 = vmatmul.mubr.msk.f32.gmra.mrb[26].mxu0 %vm104_vm1, %v59_v31 }
  0x39   :  { %3861 = vmatprep.mubr.msk.f32.mxu0 %vm104_vm1, %v60_v32 }
  0x3c   :  { %3862 = vmatmul.mubr.msk.f32.gmra.mrb[28].mxu0 %vm104_vm1, %v61_v33 }
  0x3d   :  { %3864 = vmatprep.mubr.msk.f32.mxu0 %vm104_vm1, %v62_v34 }
  0x40   :  { %3865 = vmatmul.mubr.msk.f32.gmra.mrb[30].mxu0 %vm104_vm1, %v63_v35 }
  0x41   :  { %3867 = vmatprep.mubr.msk.f32.mxu0 %vm104_vm1, %v64_v36 }
  0x44   :  { %3868 = vmatmul.mubr.msk.f32.gmra.mrb[32].mxu0 %vm104_vm1, %v65_v37 }
  0x45   :  { %3870 = vmatprep.mubr.msk.f32.mxu0 %vm104_vm1, %v66_v38 }
  0x48   :  { %3871 = vmatmul.mubr.msk.f32.gmra.mrb[34].mxu0 %vm104_vm1, %v67_v39 }
  0x49   :  { %3873 = vmatprep.mubr.msk.f32.mxu0 %vm104_vm1, %v68_v40 }
  0x4c   :  { %3874 = vmatmul.mubr.msk.f32.gmra.mrb[36].mxu0 %vm104_vm1, %v69_v41 }
  0x4d   :  { %3876 = vmatprep.mubr.msk.f32.mxu0 %vm104_vm1, %v70_v42 }
  0x50   :  { %3877 = vmatmul.mubr.msk.f32.gmra.mrb[38].mxu0 %vm104_vm1, %v71_v43 }
  0x51   :  { %3879 = vmatprep.mubr.msk.f32.mxu0 %vm104_vm1, %v72_v44 }
  0x54   :  { %3880 = vmatmul.mubr.msk.f32.gmra.mrb[40].mxu0 %vm104_vm1, %v73_v45 }
  0x55   :  { %3882 = vmatprep.mubr.msk.f32.mxu0 %vm104_vm1, %v74_v46 }
  0x58   :  { %3883 = vmatmul.mubr.msk.f32.gmra.mrb[42].mxu0 %vm104_vm1, %v75_v47 }
  0x59   :  { %3885 = vmatprep.mubr.msk.f32.mxu0 %vm104_vm1, %v76_v48 }
  0x5c   :  { %3886 = vmatmul.mubr.msk.f32.gmra.mrb[44].mxu0 %vm104_vm1, %v77_v52 }
  0x5d   :  { %3888 = vmatprep.mubr.msk.f32.mxu0 %vm104_vm1, %v78_v53 }
  0x60   :  { %3889 = vmatmul.mubr.msk.f32.gmra.mrb[46].mxu0 %vm104_vm1, %v79_v54 }
  0x61   :  { %3891 = vmatprep.mubr.msk.f32.mxu0 %vm104_vm1, %v80_v55 }
  0x64   :  { %3892 = vmatmul.mubr.msk.f32.gmra.mrb[48].mxu0 %vm104_vm1, %v81_v56 }
  0x65   :  { %3894 = vmatprep.mubr.msk.f32.mxu0 %vm104_vm1, %v82_v57 }
  0x68   :  { %3895 = vmatmul.mubr.msk.f32.gmra.mrb[50].mxu0 %vm104_vm1, %v83_v58 }
  0x69   :  { %3897 = vmatprep.mubr.msk.f32.mxu0 %vm104_vm1, %v84_v59 }
  0x6c   :  { %3898 = vmatmul.mubr.msk.f32.gmra.mrb[52].mxu0 %vm104_vm1, %v85_v60 }
  0x6d   :  { %3900 = vmatprep.mubr.msk.f32.mxu0 %vm104_vm1, %v86_v61 }
  0x70   :  { %3901 = vmatmul.mubr.msk.f32.gmra.mrb[54].mxu0 %vm104_vm1, %v87_v62 }
  0x71   :  { %3903 = vmatprep.mubr.msk.f32.mxu0 %vm104_vm1, %v88_v63 }
  0x74   :  { %3904 = vmatmul.mubr.msk.f32.gmra.mrb[56].mxu0 %vm104_vm1, %v89_v0 }
  0x75   :  { %3906 = vmatprep.mubr.msk.f32.mxu0 %vm104_vm1, %v90_v1 }
  0x78   :  { %3907 = vmatmul.mubr.msk.f32.gmra.mrb[58].mxu0 %vm104_vm1, %v91_v2 }
  0x79   :  { %3909 = vmatprep.mubr.msk.f32.mxu0 %vm104_vm1, %v92_v3 }
  0x7c   :  { %3910 = vmatmul.mubr.msk.f32.gmra.mrb[60].mxu0 %vm104_vm1, %v93_v4 }
  0x7d   :  { %3912 = vmatprep.mubr.msk.f32.mxu0 %vm104_vm1, %v94_v5 }
  0x80   :  { %3913 = vmatmul.mubr.msk.f32.gmra.mrb[62].mxu0 %vm104_vm1, %v95_v6 }
  0xd7   :  { %v3821_v11 = vpop.f32.mrb[0].mxu0 }
  0xd8   :  { %v373_v12 = vadd.f32 %v3821_v11, %v4837_v10  ;;  %v367_v13 = vpop.f32.mrb[1].mxu0 }
  0xd9   :  { %v368_v14 = vadd.f32 %v4837_v10, %v367_v13 }
  0xda   :  { %v687_v20 = vmax.f32 %v373_v12, 0.0 }
  0xdb   :  { %v686_v17 = vmax.f32 %v368_v14, 0.0  ;;  %v3824_v18 = vpop.f32.mrb[2].mxu0 }
  0xdc   :  { %v383_v21 = vadd.f32 %v3824_v18, %v4837_v10  ;;  %v377_v22 = vpop.f32.mrb[3].mxu0 }
  0xdd   :  { %v378_v23 = vadd.f32 %v4837_v10, %v377_v22  ;;  %3923 = vmatprep.mubr.msk.f32.mxu1 %vm761_vm2, %v686_v17 }
  0xde   :  { %3924 = vmatmul.mubr.msk.f32.vlgmr.msra.gmra.mrb[0].mxu1 %vm761_vm2, %v687_v20  ;;  %v689_v26 = vmax.f32 %v383_v21, 0.0 }
  0xdf   :  { %v688_v24 = vmax.f32 %v378_v23, 0.0  ;;  %v3827_v25 = vpop.f32.mrb[4].mxu0 }
  0xe0   :  { %v393_v27 = vadd.f32 %v3827_v25, %v4837_v10  ;;  %v387_v28 = vpop.f32.mrb[5].mxu0 }
  0xe1   :  { %v388_v29 = vadd.f32 %v4837_v10, %v387_v28  ;;  %3926 = vmatprep.mubr.msk.f32.mxu1 %vm761_vm2, %v688_v24 }
  0xe2   :  { %v691_v30 = vmax.f32 %v393_v27, 0.0  ;;  %3927 = vmatmul.mubr.msk.f32.gmra.mrb[2].mxu1 %vm761_vm2, %v689_v26 }
  0xe3   :  { %v690_v31 = vmax.f32 %v388_v29, 0.0  ;;  %v3830_v32 = vpop.f32.mrb[6].mxu0 }
  0xe4   :  { %v403_v33 = vadd.f32 %v3830_v32, %v4837_v10  ;;  %v397_v34 = vpop.f32.mrb[7].mxu0 }
  0xe5   :  { %v398_v35 = vadd.f32 %v4837_v10, %v397_v34  ;;  %3929 = vmatprep.mubr.msk.f32.mxu1 %vm761_vm2, %v690_v31 }
  0xe6   :  { %v693_v36 = vmax.f32 %v403_v33, 0.0  ;;  %3930 = vmatmul.mubr.msk.f32.gmra.mrb[4].mxu1 %vm761_vm2, %v691_v30 }
  0xe7   :  { %v692_v37 = vmax.f32 %v398_v35, 0.0  ;;  %v3833_v38 = vpop.f32.mrb[8].mxu0 }
  0xe8   :  { %v413_v39 = vadd.f32 %v3833_v38, %v4837_v10  ;;  %v407_v40 = vpop.f32.mrb[9].mxu0 }
  0xe9   :  { %v408_v41 = vadd.f32 %v4837_v10, %v407_v40  ;;  %3932 = vmatprep.mubr.msk.f32.mxu1 %vm761_vm2, %v692_v37 }
  0xea   :  { %v695_v42 = vmax.f32 %v413_v39, 0.0  ;;  %3933 = vmatmul.mubr.msk.f32.gmra.mrb[6].mxu1 %vm761_vm2, %v693_v36 }
  0xeb   :  { %v694_v43 = vmax.f32 %v408_v41, 0.0  ;;  %v3836_v44 = vpop.f32.mrb[10].mxu0 }
  0xec   :  { %v423_v45 = vadd.f32 %v3836_v44, %v4837_v10  ;;  %v417_v46 = vpop.f32.mrb[11].mxu0 }
  0xed   :  { %v418_v47 = vadd.f32 %v4837_v10, %v417_v46  ;;  %3935 = vmatprep.mubr.msk.f32.mxu1 %vm761_vm2, %v694_v43 }
  0xee   :  { %v697_v48 = vmax.f32 %v423_v45, 0.0  ;;  %3936 = vmatmul.mubr.msk.f32.gmra.mrb[8].mxu1 %vm761_vm2, %v695_v42 }
  0xef   :  { %v696_v49 = vmax.f32 %v418_v47, 0.0  ;;  %v3839_v50 = vpop.f32.mrb[12].mxu0 }
  0xf0   :  { %v433_v51 = vadd.f32 %v3839_v50, %v4837_v10  ;;  %v427_v52 = vpop.f32.mrb[13].mxu0 }
  0xf1   :  { %v428_v53 = vadd.f32 %v4837_v10, %v427_v52  ;;  %3938 = vmatprep.mubr.msk.f32.mxu1 %vm761_vm2, %v696_v49 }
  0xf2   :  { %v699_v54 = vmax.f32 %v433_v51, 0.0  ;;  %3939 = vmatmul.mubr.msk.f32.gmra.mrb[10].mxu1 %vm761_vm2, %v697_v48 }
  0xf3   :  { %v698_v55 = vmax.f32 %v428_v53, 0.0  ;;  %v3842_v56 = vpop.f32.mrb[14].mxu0 }
  0xf4   :  { %v443_v57 = vadd.f32 %v3842_v56, %v4837_v10  ;;  %v437_v58 = vpop.f32.mrb[15].mxu0 }
  0xf5   :  { %v438_v59 = vadd.f32 %v4837_v10, %v437_v58  ;;  %3941 = vmatprep.mubr.msk.f32.mxu1 %vm761_vm2, %v698_v55 }
  0xf6   :  { %v701_v60 = vmax.f32 %v443_v57, 0.0  ;;  %3942 = vmatmul.mubr.msk.f32.gmra.mrb[12].mxu1 %vm761_vm2, %v699_v54 }
  0xf7   :  { %v700_v61 = vmax.f32 %v438_v59, 0.0  ;;  %v3845_v62 = vpop.f32.mrb[16].mxu0 }
  0xf8   :  { %v453_v63 = vadd.f32 %v3845_v62, %v4837_v10  ;;  %v447_v0 = vpop.f32.mrb[17].mxu0 }
  0xf9   :  { %v448_v1 = vadd.f32 %v4837_v10, %v447_v0  ;;  %3944 = vmatprep.mubr.msk.f32.mxu1 %vm761_vm2, %v700_v61 }
  0xfa   :  { %v703_v2 = vmax.f32 %v453_v63, 0.0  ;;  %3945 = vmatmul.mubr.msk.f32.gmra.mrb[14].mxu1 %vm761_vm2, %v701_v60 }
  0xfb   :  { %v702_v3 = vmax.f32 %v448_v1, 0.0  ;;  %v3848_v4 = vpop.f32.mrb[18].mxu0 }
  0xfc   :  { %v463_v5 = vadd.f32 %v3848_v4, %v4837_v10  ;;  %v457_v6 = vpop.f32.mrb[19].mxu0 }
  0xfd   :  { %v458_v7 = vadd.f32 %v4837_v10, %v457_v6  ;;  %3947 = vmatprep.mubr.msk.f32.mxu1 %vm761_vm2, %v702_v3 }
  0xfe   :  { %v705_v8 = vmax.f32 %v463_v5, 0.0  ;;  %3948 = vmatmul.mubr.msk.f32.gmra.mrb[16].mxu1 %vm761_vm2, %v703_v2 }
  0xff   :  { %v704_v9 = vmax.f32 %v458_v7, 0.0  ;;  %v3851_v11 = vpop.f32.mrb[20].mxu0 }
 0x100   :  { %v473_v12 = vadd.f32 %v3851_v11, %v4837_v10  ;;  %v467_v13 = vpop.f32.mrb[21].mxu0 }
 0x101   :  { %v468_v14 = vadd.f32 %v4837_v10, %v467_v13  ;;  %3950 = vmatprep.mubr.msk.f32.mxu1 %vm761_vm2, %v704_v9 }
 0x102   :  { %v707_v15 = vmax.f32 %v473_v12, 0.0  ;;  %3951 = vmatmul.mubr.msk.f32.gmra.mrb[18].mxu1 %vm761_vm2, %v705_v8 }
 0x103   :  { %v706_v16 = vmax.f32 %v468_v14, 0.0  ;;  %v3854_v17 = vpop.f32.mrb[22].mxu0 }
 0x104   :  { %v483_v18 = vadd.f32 %v3854_v17, %v4837_v10  ;;  %v477_v19 = vpop.f32.mrb[23].mxu0 }
 0x105   :  { %v478_v20 = vadd.f32 %v4837_v10, %v477_v19  ;;  %3953 = vmatprep.mubr.msk.f32.mxu1 %vm761_vm2, %v706_v16 }
 0x106   :  { %v709_v21 = vmax.f32 %v483_v18, 0.0  ;;  %3954 = vmatmul.mubr.msk.f32.gmra.mrb[20].mxu1 %vm761_vm2, %v707_v15 }
 0x107   :  { %v708_v22 = vmax.f32 %v478_v20, 0.0  ;;  %v3857_v23 = vpop.f32.mrb[24].mxu0 }
 0x108   :  { %v493_v24 = vadd.f32 %v3857_v23, %v4837_v10  ;;  %v487_v25 = vpop.f32.mrb[25].mxu0 }
 0x109   :  { %v488_v26 = vadd.f32 %v4837_v10, %v487_v25  ;;  %3956 = vmatprep.mubr.msk.f32.mxu1 %vm761_vm2, %v708_v22 }
 0x10a   :  { %v711_v27 = vmax.f32 %v493_v24, 0.0  ;;  %3957 = vmatmul.mubr.msk.f32.gmra.mrb[22].mxu1 %vm761_vm2, %v709_v21 }
 0x10b   :  { %v710_v28 = vmax.f32 %v488_v26, 0.0  ;;  %v3860_v29 = vpop.f32.mrb[26].mxu0 }
 0x10c   :  { %v503_v30 = vadd.f32 %v3860_v29, %v4837_v10  ;;  %v497_v31 = vpop.f32.mrb[27].mxu0 }
 0x10d   :  { %v498_v32 = vadd.f32 %v4837_v10, %v497_v31  ;;  %3959 = vmatprep.mubr.msk.f32.mxu1 %vm761_vm2, %v710_v28 }
 0x10e   :  { %v713_v33 = vmax.f32 %v503_v30, 0.0  ;;  %3960 = vmatmul.mubr.msk.f32.gmra.mrb[24].mxu1 %vm761_vm2, %v711_v27 }
 0x10f   :  { %v712_v34 = vmax.f32 %v498_v32, 0.0  ;;  %v3863_v35 = vpop.f32.mrb[28].mxu0 }
 0x110   :  { %v513_v36 = vadd.f32 %v3863_v35, %v4837_v10  ;;  %v507_v37 = vpop.f32.mrb[29].mxu0 }
 0x111   :  { %v508_v38 = vadd.f32 %v4837_v10, %v507_v37  ;;  %3962 = vmatprep.mubr.msk.f32.mxu1 %vm761_vm2, %v712_v34 }
 0x112   :  { %v715_v39 = vmax.f32 %v513_v36, 0.0  ;;  %3963 = vmatmul.mubr.msk.f32.gmra.mrb[26].mxu1 %vm761_vm2, %v713_v33 }
 0x113   :  { %v714_v40 = vmax.f32 %v508_v38, 0.0  ;;  %v3866_v41 = vpop.f32.mrb[30].mxu0 }
 0x114   :  { %v523_v42 = vadd.f32 %v3866_v41, %v4837_v10  ;;  %v517_v43 = vpop.f32.mrb[31].mxu0 }
 0x115   :  { %v518_v44 = vadd.f32 %v4837_v10, %v517_v43  ;;  %3965 = vmatprep.mubr.msk.f32.mxu1 %vm761_vm2, %v714_v40 }
 0x116   :  { %v717_v45 = vmax.f32 %v523_v42, 0.0  ;;  %3966 = vmatmul.mubr.msk.f32.gmra.mrb[28].mxu1 %vm761_vm2, %v715_v39 }
 0x117   :  { %v716_v46 = vmax.f32 %v518_v44, 0.0  ;;  %v3869_v47 = vpop.f32.mrb[32].mxu0 }
 0x118   :  { %v533_v48 = vadd.f32 %v3869_v47, %v4837_v10  ;;  %v527_v49 = vpop.f32.mrb[33].mxu0 }
 0x119   :  { %v528_v50 = vadd.f32 %v4837_v10, %v527_v49  ;;  %3968 = vmatprep.mubr.msk.f32.mxu1 %vm761_vm2, %v716_v46 }
 0x11a   :  { %v719_v51 = vmax.f32 %v533_v48, 0.0  ;;  %3969 = vmatmul.mubr.msk.f32.gmra.mrb[30].mxu1 %vm761_vm2, %v717_v45 }
 0x11b   :  { %v718_v52 = vmax.f32 %v528_v50, 0.0  ;;  %v3872_v53 = vpop.f32.mrb[34].mxu0 }
 0x11c   :  { %v543_v54 = vadd.f32 %v3872_v53, %v4837_v10  ;;  %v537_v55 = vpop.f32.mrb[35].mxu0 }
 0x11d   :  { %v538_v56 = vadd.f32 %v4837_v10, %v537_v55  ;;  %3971 = vmatprep.mubr.msk.f32.mxu1 %vm761_vm2, %v718_v52 }
 0x11e   :  { %v721_v57 = vmax.f32 %v543_v54, 0.0  ;;  %3972 = vmatmul.mubr.msk.f32.gmra.mrb[32].mxu1 %vm761_vm2, %v719_v51 }
 0x11f   :  { %v720_v58 = vmax.f32 %v538_v56, 0.0  ;;  %v3875_v59 = vpop.f32.mrb[36].mxu0 }
 0x120   :  { %v553_v60 = vadd.f32 %v3875_v59, %v4837_v10  ;;  %v547_v61 = vpop.f32.mrb[37].mxu0 }
 0x121   :  { %v548_v62 = vadd.f32 %v4837_v10, %v547_v61  ;;  %3974 = vmatprep.mubr.msk.f32.mxu1 %vm761_vm2, %v720_v58 }
 0x122   :  { %v723_v63 = vmax.f32 %v553_v60, 0.0  ;;  %3975 = vmatmul.mubr.msk.f32.gmra.mrb[34].mxu1 %vm761_vm2, %v721_v57 }
 0x123   :  { %v722_v0 = vmax.f32 %v548_v62, 0.0  ;;  %v3878_v1 = vpop.f32.mrb[38].mxu0 }
 0x124   :  { %v563_v2 = vadd.f32 %v3878_v1, %v4837_v10  ;;  %v557_v3 = vpop.f32.mrb[39].mxu0 }
 0x125   :  { %v558_v4 = vadd.f32 %v4837_v10, %v557_v3  ;;  %3977 = vmatprep.mubr.msk.f32.mxu1 %vm761_vm2, %v722_v0 }
 0x126   :  { %v725_v5 = vmax.f32 %v563_v2, 0.0  ;;  %3978 = vmatmul.mubr.msk.f32.gmra.mrb[36].mxu1 %vm761_vm2, %v723_v63 }
 0x127   :  { %v724_v6 = vmax.f32 %v558_v4, 0.0  ;;  %v3881_v7 = vpop.f32.mrb[40].mxu0 }
 0x128   :  { %v573_v8 = vadd.f32 %v3881_v7, %v4837_v10  ;;  %v567_v9 = vpop.f32.mrb[41].mxu0 }
 0x129   :  { %v568_v11 = vadd.f32 %v4837_v10, %v567_v9  ;;  %3980 = vmatprep.mubr.msk.f32.mxu1 %vm761_vm2, %v724_v6 }
 0x12a   :  { %v727_v12 = vmax.f32 %v573_v8, 0.0  ;;  %3981 = vmatmul.mubr.msk.f32.gmra.mrb[38].mxu1 %vm761_vm2, %v725_v5 }
 0x12b   :  { %v726_v13 = vmax.f32 %v568_v11, 0.0  ;;  %v3884_v14 = vpop.f32.mrb[42].mxu0 }
 0x12c   :  { %v583_v15 = vadd.f32 %v3884_v14, %v4837_v10  ;;  %v577_v16 = vpop.f32.mrb[43].mxu0 }
 0x12d   :  { %v578_v17 = vadd.f32 %v4837_v10, %v577_v16  ;;  %3983 = vmatprep.mubr.msk.f32.mxu1 %vm761_vm2, %v726_v13 }
 0x12e   :  { %v729_v18 = vmax.f32 %v583_v15, 0.0  ;;  %3984 = vmatmul.mubr.msk.f32.gmra.mrb[40].mxu1 %vm761_vm2, %v727_v12 }
 0x12f   :  { %v728_v19 = vmax.f32 %v578_v17, 0.0  ;;  %v3887_v20 = vpop.f32.mrb[44].mxu0  ;;  %v2055_v17 = vld [vmem:[%s6029_s7] sm:$0xff] }
 0x130   :  { %v593_v21 = vadd.f32 %v3887_v20, %v4837_v10  ;;  %v587_v22 = vpop.f32.mrb[45].mxu0 }
 0x131   :  { %v588_v23 = vadd.f32 %v4837_v10, %v587_v22  ;;  %3986 = vmatprep.mubr.msk.f32.mxu1 %vm761_vm2, %v728_v19 }
 0x132   :  { %v731_v24 = vmax.f32 %v593_v21, 0.0  ;;  %3987 = vmatmul.mubr.msk.f32.gmra.mrb[42].mxu1 %vm761_vm2, %v729_v18  ;;  %v2056_v18 = vld [vmem:[%s6029_s7 + $0x8] sm:$0xff] }
 0x133   :  { %v730_v25 = vmax.f32 %v588_v23, 0.0  ;;  %v3890_v26 = vpop.f32.mrb[46].mxu0  ;;  %v4243_v19 = vpack.c.bf16 %v2056_v18, %v2055_v17 }
 0x134   :  { %v603_v27 = vadd.f32 %v3890_v26, %v4837_v10  ;;  %v597_v28 = vpop.f32.mrb[47].mxu0 }
 0x135   :  { %v598_v29 = vadd.f32 %v4837_v10, %v597_v28  ;;  %3989 = vmatprep.mubr.msk.f32.mxu1 %vm761_vm2, %v730_v25  ;;  %4244 = vmatprep.subr.bf16.mxu1 %v4243_v19  ;;  %v2058_v25 = vld [vmem:[%s6029_s7 + $0x18] sm:$0xff] }
 0x136   :  { %v733_v30 = vmax.f32 %v603_v27, 0.0  ;;  %3990 = vmatmul.mubr.msk.f32.gmra.mrb[44].mxu1 %vm761_vm2, %v731_v24  ;;  %v2057_v24 = vld [vmem:[%s6029_s7 + $0x10] sm:$0xff] }
 0x137   :  { %v732_v31 = vmax.f32 %v598_v29, 0.0  ;;  %v3893_v32 = vpop.f32.mrb[48].mxu0  ;;  %4246 = vmatpush3.bf16.msra.mxu1 %v4243_v19  ;;  %v4247_v28 = vpack.c.bf16 %v2058_v25, %v2057_v24 }
 0x138   :  { %v613_v33 = vadd.f32 %v3893_v32, %v4837_v10  ;;  %v607_v34 = vpop.f32.mrb[49].mxu0 }
 0x139   :  { %v608_v35 = vadd.f32 %v4837_v10, %v607_v34  ;;  %3992 = vmatprep.mubr.msk.f32.mxu1 %vm761_vm2, %v732_v31  ;;  %4248 = vmatprep.subr.bf16.mxu1 %v4247_v28 }
 0x13a   :  { %v735_v36 = vmax.f32 %v613_v33, 0.0  ;;  %3993 = vmatmul.mubr.msk.f32.gmra.mrb[46].mxu1 %vm761_vm2, %v733_v30 }
 0x13b   :  { %v734_v37 = vmax.f32 %v608_v35, 0.0  ;;  %v3896_v38 = vpop.f32.mrb[50].mxu0  ;;  %4250 = vmatpush3.bf16.msra.mxu1 %v4247_v28 }
 0x13c   :  { %v623_v39 = vadd.f32 %v3896_v38, %v4837_v10  ;;  %v617_v40 = vpop.f32.mrb[51].mxu0 }
 0x13d   :  { %v618_v41 = vadd.f32 %v4837_v10, %v617_v40  ;;  %3995 = vmatprep.mubr.msk.f32.mxu1 %vm761_vm2, %v734_v37 }
 0x13e   :  { %v737_v42 = vmax.f32 %v623_v39, 0.0  ;;  %3996 = vmatmul.mubr.msk.f32.gmra.mrb[48].mxu1 %vm761_vm2, %v735_v36 }
 0x13f   :  { %v736_v43 = vmax.f32 %v618_v41, 0.0  ;;  %v3899_v44 = vpop.f32.mrb[52].mxu0 }
 0x140   :  { %v633_v45 = vadd.f32 %v3899_v44, %v4837_v10  ;;  %v627_v46 = vpop.f32.mrb[53].mxu0 }
 0x141   :  { %v628_v47 = vadd.f32 %v4837_v10, %v627_v46  ;;  %3998 = vmatprep.mubr.msk.f32.mxu1 %vm761_vm2, %v736_v43 }
 0x142   :  { %v739_v48 = vmax.f32 %v633_v45, 0.0  ;;  %3999 = vmatmul.mubr.msk.f32.gmra.mrb[50].mxu1 %vm761_vm2, %v737_v42 }
 0x143   :  { %v738_v49 = vmax.f32 %v628_v47, 0.0  ;;  %v3902_v50 = vpop.f32.mrb[54].mxu0 }
 0x144   :  { %v643_v51 = vadd.f32 %v3902_v50, %v4837_v10  ;;  %v637_v52 = vpop.f32.mrb[55].mxu0 }
 0x145   :  { %v638_v53 = vadd.f32 %v4837_v10, %v637_v52  ;;  %4001 = vmatprep.mubr.msk.f32.mxu1 %vm761_vm2, %v738_v49 }
 0x146   :  { %v741_v54 = vmax.f32 %v643_v51, 0.0  ;;  %4002 = vmatmul.mubr.msk.f32.gmra.mrb[52].mxu1 %vm761_vm2, %v739_v48 }
 0x147   :  { %v740_v55 = vmax.f32 %v638_v53, 0.0  ;;  %v3905_v56 = vpop.f32.mrb[56].mxu0 }
 0x148   :  { %v653_v57 = vadd.f32 %v3905_v56, %v4837_v10  ;;  %v647_v58 = vpop.f32.mrb[57].mxu0 }
 0x149   :  { %v648_v59 = vadd.f32 %v4837_v10, %v647_v58  ;;  %4004 = vmatprep.mubr.msk.f32.mxu1 %vm761_vm2, %v740_v55 }
 0x14a   :  { %v743_v60 = vmax.f32 %v653_v57, 0.0  ;;  %4005 = vmatmul.mubr.msk.f32.gmra.mrb[54].mxu1 %vm761_vm2, %v741_v54 }
 0x14b   :  { %v742_v61 = vmax.f32 %v648_v59, 0.0  ;;  %v3908_v62 = vpop.f32.mrb[58].mxu0 }
 0x14c   :  { %v663_v63 = vadd.f32 %v3908_v62, %v4837_v10  ;;  %v657_v0 = vpop.f32.mrb[59].mxu0 }
 0x14d   :  { %v658_v1 = vadd.f32 %v4837_v10, %v657_v0  ;;  %4007 = vmatprep.mubr.msk.f32.mxu1 %vm761_vm2, %v742_v61 }
 0x14e   :  { %v745_v2 = vmax.f32 %v663_v63, 0.0  ;;  %4008 = vmatmul.mubr.msk.f32.gmra.mrb[56].mxu1 %vm761_vm2, %v743_v60 }
 0x14f   :  { %v744_v3 = vmax.f32 %v658_v1, 0.0  ;;  %v3911_v4 = vpop.f32.mrb[60].mxu0 }
 0x150   :  { %v673_v5 = vadd.f32 %v3911_v4, %v4837_v10  ;;  %v667_v6 = vpop.f32.mrb[61].mxu0 }
 0x151   :  { %v668_v7 = vadd.f32 %v4837_v10, %v667_v6  ;;  %4010 = vmatprep.mubr.msk.f32.mxu1 %vm761_vm2, %v744_v3 }
 0x152   :  { %v747_v8 = vmax.f32 %v673_v5, 0.0  ;;  %4011 = vmatmul.mubr.msk.f32.gmra.mrb[58].mxu1 %vm761_vm2, %v745_v2 }
 0x153   :  { %v746_v9 = vmax.f32 %v668_v7, 0.0  ;;  %v3914_v11 = vpop.f32.mrb[62].mxu0 }
 0x154   :  { %v683_v12 = vadd.f32 %v3914_v11, %v4837_v10  ;;  %v677_v13 = vpop.f32.mrb[63].mxu0 }
 0x155   :  { %v678_v14 = vadd.f32 %v4837_v10, %v677_v13  ;;  %4013 = vmatprep.mubr.msk.f32.mxu1 %vm761_vm2, %v746_v9  ;;  %v4982_v10 = vld [vmem:[%s6030_s4] ss:$0 sm:$0xff] }
 0x156   :  { %v749_v15 = vmax.f32 %v683_v12, 0.0  ;;  %4014 = vmatmul.mubr.msk.f32.gmra.mrb[60].mxu1 %vm761_vm2, %v747_v8 }
 0x157   :  { %v748_v16 = vmax.f32 %v678_v14, 0.0 }
 0x159   :  { %4016 = vmatprep.mubr.msk.f32.mxu1 %vm761_vm2, %v748_v16 }
 0x15a   :  { %4017 = vmatmul.mubr.msk.f32.gmra.mrb[62].mxu1 %vm761_vm2, %v749_v15 }
 0x1b1   :  { %v3925_v20 = vpop.f32.mrb[0].mxu1 }
 0x1b2   :  { %v1026_v21 = vadd.f32 %v3925_v20, %v4982_v10  ;;  %v1020_v22 = vpop.f32.mrb[1].mxu1 }
 0x1b3   :  { %v1021_v23 = vadd.f32 %v4982_v10, %v1020_v22 }
 0x1b4   :  { %v1340_v29 = vmax.f32 %v1026_v21, 0.0 }
 0x1b5   :  { %v1339_v26 = vmax.f32 %v1021_v23, 0.0  ;;  %v3928_v27 = vpop.f32.mrb[2].mxu1 }
 0x1b6   :  { %v1036_v30 = vadd.f32 %v3928_v27, %v4982_v10  ;;  %v1030_v31 = vpop.f32.mrb[3].mxu1 }
 0x1b7   :  { %v1031_v32 = vadd.f32 %v4982_v10, %v1030_v31  ;;  %4027 = vmatprep.mubr.msk.f32.mxu0 %vm761_vm2, %v1339_v26 }
 0x1b8   :  { %4028 = vmatmul.mubr.msk.f32.vlgmr.msra.gmra.mrb[64].mxu0 %vm761_vm2, %v1340_v29  ;;  %v1342_v35 = vmax.f32 %v1036_v30, 0.0 }
 0x1b9   :  { %v1341_v33 = vmax.f32 %v1031_v32, 0.0  ;;  %v3931_v34 = vpop.f32.mrb[4].mxu1 }
 0x1ba   :  { %v1046_v36 = vadd.f32 %v3931_v34, %v4982_v10  ;;  %v1040_v37 = vpop.f32.mrb[5].mxu1 }
 0x1bb   :  { %v1041_v38 = vadd.f32 %v4982_v10, %v1040_v37  ;;  %4030 = vmatprep.mubr.msk.f32.mxu0 %vm761_vm2, %v1341_v33 }
 0x1bc   :  { %v1344_v39 = vmax.f32 %v1046_v36, 0.0  ;;  %4031 = vmatmul.mubr.msk.f32.gmra.mrb[66].mxu0 %vm761_vm2, %v1342_v35 }
 0x1bd   :  { %v1343_v40 = vmax.f32 %v1041_v38, 0.0  ;;  %v3934_v41 = vpop.f32.mrb[6].mxu1 }
 0x1be   :  { %v1056_v42 = vadd.f32 %v3934_v41, %v4982_v10  ;;  %v1050_v43 = vpop.f32.mrb[7].mxu1 }
 0x1bf   :  { %v1051_v44 = vadd.f32 %v4982_v10, %v1050_v43  ;;  %4033 = vmatprep.mubr.msk.f32.mxu0 %vm761_vm2, %v1343_v40 }
 0x1c0   :  { %v1346_v45 = vmax.f32 %v1056_v42, 0.0  ;;  %4034 = vmatmul.mubr.msk.f32.gmra.mrb[68].mxu0 %vm761_vm2, %v1344_v39 }
 0x1c1   :  { %v1345_v46 = vmax.f32 %v1051_v44, 0.0  ;;  %v3937_v47 = vpop.f32.mrb[8].mxu1 }
 0x1c2   :  { %v1066_v48 = vadd.f32 %v3937_v47, %v4982_v10  ;;  %v1060_v49 = vpop.f32.mrb[9].mxu1 }
 0x1c3   :  { %v1061_v50 = vadd.f32 %v4982_v10, %v1060_v49  ;;  %4036 = vmatprep.mubr.msk.f32.mxu0 %vm761_vm2, %v1345_v46 }
 0x1c4   :  { %v1348_v51 = vmax.f32 %v1066_v48, 0.0  ;;  %4037 = vmatmul.mubr.msk.f32.gmra.mrb[70].mxu0 %vm761_vm2, %v1346_v45 }
 0x1c5   :  { %v1347_v52 = vmax.f32 %v1061_v50, 0.0  ;;  %v3940_v53 = vpop.f32.mrb[10].mxu1 }
 0x1c6   :  { %v1076_v54 = vadd.f32 %v3940_v53, %v4982_v10  ;;  %v1070_v55 = vpop.f32.mrb[11].mxu1 }
 0x1c7   :  { %v1071_v56 = vadd.f32 %v4982_v10, %v1070_v55  ;;  %4039 = vmatprep.mubr.msk.f32.mxu0 %vm761_vm2, %v1347_v52 }
 0x1c8   :  { %v1350_v57 = vmax.f32 %v1076_v54, 0.0  ;;  %4040 = vmatmul.mubr.msk.f32.gmra.mrb[72].mxu0 %vm761_vm2, %v1348_v51 }
 0x1c9   :  { %v1349_v58 = vmax.f32 %v1071_v56, 0.0  ;;  %v3943_v59 = vpop.f32.mrb[12].mxu1 }
 0x1ca   :  { %v1086_v60 = vadd.f32 %v3943_v59, %v4982_v10  ;;  %v1080_v61 = vpop.f32.mrb[13].mxu1 }
 0x1cb   :  { %v1081_v62 = vadd.f32 %v4982_v10, %v1080_v61  ;;  %4042 = vmatprep.mubr.msk.f32.mxu0 %vm761_vm2, %v1349_v58 }
 0x1cc   :  { %v1352_v63 = vmax.f32 %v1086_v60, 0.0  ;;  %4043 = vmatmul.mubr.msk.f32.gmra.mrb[74].mxu0 %vm761_vm2, %v1350_v57 }
 0x1cd   :  { %v1351_v0 = vmax.f32 %v1081_v62, 0.0  ;;  %v3946_v1 = vpop.f32.mrb[14].mxu1 }
 0x1ce   :  { %v1096_v2 = vadd.f32 %v3946_v1, %v4982_v10  ;;  %v1090_v3 = vpop.f32.mrb[15].mxu1 }
 0x1cf   :  { %v1091_v4 = vadd.f32 %v4982_v10, %v1090_v3  ;;  %4045 = vmatprep.mubr.msk.f32.mxu0 %vm761_vm2, %v1351_v0 }
 0x1d0   :  { %v1354_v5 = vmax.f32 %v1096_v2, 0.0  ;;  %4046 = vmatmul.mubr.msk.f32.gmra.mrb[76].mxu0 %vm761_vm2, %v1352_v63 }
 0x1d1   :  { %v1353_v6 = vmax.f32 %v1091_v4, 0.0  ;;  %v3949_v7 = vpop.f32.mrb[16].mxu1 }
 0x1d2   :  { %v1106_v8 = vadd.f32 %v3949_v7, %v4982_v10  ;;  %v1100_v9 = vpop.f32.mrb[17].mxu1 }
 0x1d3   :  { %v1101_v11 = vadd.f32 %v4982_v10, %v1100_v9  ;;  %4048 = vmatprep.mubr.msk.f32.mxu0 %vm761_vm2, %v1353_v6 }
 0x1d4   :  { %v1356_v12 = vmax.f32 %v1106_v8, 0.0  ;;  %4049 = vmatmul.mubr.msk.f32.gmra.mrb[78].mxu0 %vm761_vm2, %v1354_v5 }
 0x1d5   :  { %v1355_v13 = vmax.f32 %v1101_v11, 0.0  ;;  %v3952_v14 = vpop.f32.mrb[18].mxu1 }
 0x1d6   :  { %v1116_v15 = vadd.f32 %v3952_v14, %v4982_v10  ;;  %v1110_v16 = vpop.f32.mrb[19].mxu1 }
 0x1d7   :  { %v1111_v17 = vadd.f32 %v4982_v10, %v1110_v16  ;;  %4051 = vmatprep.mubr.msk.f32.mxu0 %vm761_vm2, %v1355_v13 }
 0x1d8   :  { %v1358_v18 = vmax.f32 %v1116_v15, 0.0  ;;  %4052 = vmatmul.mubr.msk.f32.gmra.mrb[80].mxu0 %vm761_vm2, %v1356_v12 }
 0x1d9   :  { %v1357_v19 = vmax.f32 %v1111_v17, 0.0  ;;  %v3955_v20 = vpop.f32.mrb[20].mxu1 }
 0x1da   :  { %v1126_v21 = vadd.f32 %v3955_v20, %v4982_v10  ;;  %v1120_v22 = vpop.f32.mrb[21].mxu1 }
 0x1db   :  { %v1121_v23 = vadd.f32 %v4982_v10, %v1120_v22  ;;  %4054 = vmatprep.mubr.msk.f32.mxu0 %vm761_vm2, %v1357_v19 }
 0x1dc   :  { %v1360_v24 = vmax.f32 %v1126_v21, 0.0  ;;  %4055 = vmatmul.mubr.msk.f32.gmra.mrb[82].mxu0 %vm761_vm2, %v1358_v18 }
 0x1dd   :  { %v1359_v25 = vmax.f32 %v1121_v23, 0.0  ;;  %v3958_v26 = vpop.f32.mrb[22].mxu1 }
 0x1de   :  { %v1136_v27 = vadd.f32 %v3958_v26, %v4982_v10  ;;  %v1130_v28 = vpop.f32.mrb[23].mxu1 }
 0x1df   :  { %v1131_v29 = vadd.f32 %v4982_v10, %v1130_v28  ;;  %4057 = vmatprep.mubr.msk.f32.mxu0 %vm761_vm2, %v1359_v25 }
 0x1e0   :  { %v1362_v30 = vmax.f32 %v1136_v27, 0.0  ;;  %4058 = vmatmul.mubr.msk.f32.gmra.mrb[84].mxu0 %vm761_vm2, %v1360_v24 }
 0x1e1   :  { %v1361_v31 = vmax.f32 %v1131_v29, 0.0  ;;  %v3961_v32 = vpop.f32.mrb[24].mxu1 }
 0x1e2   :  { %v1146_v33 = vadd.f32 %v3961_v32, %v4982_v10  ;;  %v1140_v34 = vpop.f32.mrb[25].mxu1 }
 0x1e3   :  { %v1141_v35 = vadd.f32 %v4982_v10, %v1140_v34  ;;  %4060 = vmatprep.mubr.msk.f32.mxu0 %vm761_vm2, %v1361_v31 }
 0x1e4   :  { %v1364_v36 = vmax.f32 %v1146_v33, 0.0  ;;  %4061 = vmatmul.mubr.msk.f32.gmra.mrb[86].mxu0 %vm761_vm2, %v1362_v30 }
 0x1e5   :  { %v1363_v37 = vmax.f32 %v1141_v35, 0.0  ;;  %v3964_v38 = vpop.f32.mrb[26].mxu1 }
 0x1e6   :  { %v1156_v39 = vadd.f32 %v3964_v38, %v4982_v10  ;;  %v1150_v40 = vpop.f32.mrb[27].mxu1 }
 0x1e7   :  { %v1151_v41 = vadd.f32 %v4982_v10, %v1150_v40  ;;  %4063 = vmatprep.mubr.msk.f32.mxu0 %vm761_vm2, %v1363_v37 }
 0x1e8   :  { %v1366_v42 = vmax.f32 %v1156_v39, 0.0  ;;  %4064 = vmatmul.mubr.msk.f32.gmra.mrb[88].mxu0 %vm761_vm2, %v1364_v36 }
 0x1e9   :  { %v1365_v43 = vmax.f32 %v1151_v41, 0.0  ;;  %v3967_v44 = vpop.f32.mrb[28].mxu1 }
 0x1ea   :  { %v1166_v45 = vadd.f32 %v3967_v44, %v4982_v10  ;;  %v1160_v46 = vpop.f32.mrb[29].mxu1 }
 0x1eb   :  { %v1161_v47 = vadd.f32 %v4982_v10, %v1160_v46  ;;  %4066 = vmatprep.mubr.msk.f32.mxu0 %vm761_vm2, %v1365_v43 }
 0x1ec   :  { %v1368_v48 = vmax.f32 %v1166_v45, 0.0  ;;  %4067 = vmatmul.mubr.msk.f32.gmra.mrb[90].mxu0 %vm761_vm2, %v1366_v42 }
 0x1ed   :  { %v1367_v49 = vmax.f32 %v1161_v47, 0.0  ;;  %v3970_v50 = vpop.f32.mrb[30].mxu1 }
 0x1ee   :  { %v1176_v51 = vadd.f32 %v3970_v50, %v4982_v10  ;;  %v1170_v52 = vpop.f32.mrb[31].mxu1 }
 0x1ef   :  { %v1171_v53 = vadd.f32 %v4982_v10, %v1170_v52  ;;  %4069 = vmatprep.mubr.msk.f32.mxu0 %vm761_vm2, %v1367_v49 }
 0x1f0   :  { %v1370_v54 = vmax.f32 %v1176_v51, 0.0  ;;  %4070 = vmatmul.mubr.msk.f32.gmra.mrb[92].mxu0 %vm761_vm2, %v1368_v48 }
 0x1f1   :  { %v1369_v55 = vmax.f32 %v1171_v53, 0.0  ;;  %v3973_v56 = vpop.f32.mrb[32].mxu1 }
 0x1f2   :  { %v1186_v57 = vadd.f32 %v3973_v56, %v4982_v10  ;;  %v1180_v58 = vpop.f32.mrb[33].mxu1 }
 0x1f3   :  { %v1181_v59 = vadd.f32 %v4982_v10, %v1180_v58  ;;  %4072 = vmatprep.mubr.msk.f32.mxu0 %vm761_vm2, %v1369_v55 }
 0x1f4   :  { %v1372_v60 = vmax.f32 %v1186_v57, 0.0  ;;  %4073 = vmatmul.mubr.msk.f32.gmra.mrb[94].mxu0 %vm761_vm2, %v1370_v54 }
 0x1f5   :  { %v1371_v61 = vmax.f32 %v1181_v59, 0.0  ;;  %v3976_v62 = vpop.f32.mrb[34].mxu1 }
 0x1f6   :  { %v1196_v63 = vadd.f32 %v3976_v62, %v4982_v10  ;;  %v1190_v0 = vpop.f32.mrb[35].mxu1 }
 0x1f7   :  { %v1191_v1 = vadd.f32 %v4982_v10, %v1190_v0  ;;  %4075 = vmatprep.mubr.msk.f32.mxu0 %vm761_vm2, %v1371_v61 }
 0x1f8   :  { %v1374_v2 = vmax.f32 %v1196_v63, 0.0  ;;  %4076 = vmatmul.mubr.msk.f32.gmra.mrb[96].mxu0 %vm761_vm2, %v1372_v60 }
 0x1f9   :  { %v1373_v3 = vmax.f32 %v1191_v1, 0.0  ;;  %v3979_v4 = vpop.f32.mrb[36].mxu1 }
 0x1fa   :  { %v1206_v5 = vadd.f32 %v3979_v4, %v4982_v10  ;;  %v1200_v6 = vpop.f32.mrb[37].mxu1 }
 0x1fb   :  { %v1201_v7 = vadd.f32 %v4982_v10, %v1200_v6  ;;  %4078 = vmatprep.mubr.msk.f32.mxu0 %vm761_vm2, %v1373_v3 }
 0x1fc   :  { %v1376_v8 = vmax.f32 %v1206_v5, 0.0  ;;  %4079 = vmatmul.mubr.msk.f32.gmra.mrb[98].mxu0 %vm761_vm2, %v1374_v2 }
 0x1fd   :  { %v1375_v9 = vmax.f32 %v1201_v7, 0.0  ;;  %v3982_v11 = vpop.f32.mrb[38].mxu1 }
 0x1fe   :  { %v1216_v12 = vadd.f32 %v3982_v11, %v4982_v10  ;;  %v1210_v13 = vpop.f32.mrb[39].mxu1 }
 0x1ff   :  { %v1211_v14 = vadd.f32 %v4982_v10, %v1210_v13  ;;  %4081 = vmatprep.mubr.msk.f32.mxu0 %vm761_vm2, %v1375_v9 }
 0x200   :  { %v1378_v15 = vmax.f32 %v1216_v12, 0.0  ;;  %4082 = vmatmul.mubr.msk.f32.gmra.mrb[100].mxu0 %vm761_vm2, %v1376_v8 }
 0x201   :  { %v1377_v16 = vmax.f32 %v1211_v14, 0.0  ;;  %v3985_v17 = vpop.f32.mrb[40].mxu1 }
 0x202   :  { %v1226_v18 = vadd.f32 %v3985_v17, %v4982_v10  ;;  %v1220_v19 = vpop.f32.mrb[41].mxu1 }
 0x203   :  { %v1221_v20 = vadd.f32 %v4982_v10, %v1220_v19  ;;  %4084 = vmatprep.mubr.msk.f32.mxu0 %vm761_vm2, %v1377_v16 }
 0x204   :  { %v1380_v21 = vmax.f32 %v1226_v18, 0.0  ;;  %4085 = vmatmul.mubr.msk.f32.gmra.mrb[102].mxu0 %vm761_vm2, %v1378_v15 }
 0x205   :  { %v1379_v22 = vmax.f32 %v1221_v20, 0.0  ;;  %v3988_v23 = vpop.f32.mrb[42].mxu1 }
 0x206   :  { %v1236_v24 = vadd.f32 %v3988_v23, %v4982_v10  ;;  %v1230_v25 = vpop.f32.mrb[43].mxu1 }
 0x207   :  { %v1231_v26 = vadd.f32 %v4982_v10, %v1230_v25  ;;  %4087 = vmatprep.mubr.msk.f32.mxu0 %vm761_vm2, %v1379_v22 }
 0x208   :  { %v1382_v27 = vmax.f32 %v1236_v24, 0.0  ;;  %4088 = vmatmul.mubr.msk.f32.gmra.mrb[104].mxu0 %vm761_vm2, %v1380_v21 }
 0x209   :  { %v1381_v28 = vmax.f32 %v1231_v26, 0.0  ;;  %v3991_v29 = vpop.f32.mrb[44].mxu1  ;;  %v5121_v26 = vld [vmem:[%s6031_s6] ss:$0 sm:$0xff] }
 0x20a   :  { %v1246_v30 = vadd.f32 %v3991_v29, %v4982_v10  ;;  %v1240_v31 = vpop.f32.mrb[45].mxu1 }
 0x20b   :  { %v1241_v32 = vadd.f32 %v4982_v10, %v1240_v31  ;;  %4090 = vmatprep.mubr.msk.f32.mxu0 %vm761_vm2, %v1381_v28 }
 0x20c   :  { %v1384_v33 = vmax.f32 %v1246_v30, 0.0  ;;  %4091 = vmatmul.mubr.msk.f32.gmra.mrb[106].mxu0 %vm761_vm2, %v1382_v27 }
 0x20d   :  { %v1383_v34 = vmax.f32 %v1241_v32, 0.0  ;;  %v3994_v35 = vpop.f32.mrb[46].mxu1 }
 0x20e   :  { %v1256_v36 = vadd.f32 %v3994_v35, %v4982_v10  ;;  %v1250_v37 = vpop.f32.mrb[47].mxu1 }
 0x20f   :  { %v1251_v38 = vadd.f32 %v4982_v10, %v1250_v37  ;;  %4093 = vmatprep.mubr.msk.f32.mxu0 %vm761_vm2, %v1383_v34 }
 0x210   :  { %v1386_v39 = vmax.f32 %v1256_v36, 0.0  ;;  %4094 = vmatmul.mubr.msk.f32.gmra.mrb[108].mxu0 %vm761_vm2, %v1384_v33 }
 0x211   :  { %v1385_v40 = vmax.f32 %v1251_v38, 0.0  ;;  %v3997_v41 = vpop.f32.mrb[48].mxu1 }
 0x212   :  { %v1266_v42 = vadd.f32 %v3997_v41, %v4982_v10  ;;  %v1260_v43 = vpop.f32.mrb[49].mxu1 }
 0x213   :  { %v1261_v44 = vadd.f32 %v4982_v10, %v1260_v43  ;;  %4096 = vmatprep.mubr.msk.f32.mxu0 %vm761_vm2, %v1385_v40 }
 0x214   :  { %v1388_v45 = vmax.f32 %v1266_v42, 0.0  ;;  %4097 = vmatmul.mubr.msk.f32.gmra.mrb[110].mxu0 %vm761_vm2, %v1386_v39 }
 0x215   :  { %v1387_v46 = vmax.f32 %v1261_v44, 0.0  ;;  %v4000_v47 = vpop.f32.mrb[50].mxu1 }
 0x216   :  { %v1276_v48 = vadd.f32 %v4000_v47, %v4982_v10  ;;  %v1270_v49 = vpop.f32.mrb[51].mxu1 }
 0x217   :  { %v1271_v50 = vadd.f32 %v4982_v10, %v1270_v49  ;;  %4099 = vmatprep.mubr.msk.f32.mxu0 %vm761_vm2, %v1387_v46 }
 0x218   :  { %v1390_v51 = vmax.f32 %v1276_v48, 0.0  ;;  %4100 = vmatmul.mubr.msk.f32.gmra.mrb[112].mxu0 %vm761_vm2, %v1388_v45 }
 0x219   :  { %v1389_v52 = vmax.f32 %v1271_v50, 0.0  ;;  %v4003_v53 = vpop.f32.mrb[52].mxu1 }
 0x21a   :  { %v1286_v54 = vadd.f32 %v4003_v53, %v4982_v10  ;;  %v1280_v55 = vpop.f32.mrb[53].mxu1 }
 0x21b   :  { %v1281_v56 = vadd.f32 %v4982_v10, %v1280_v55  ;;  %4102 = vmatprep.mubr.msk.f32.mxu0 %vm761_vm2, %v1389_v52 }
 0x21c   :  { %v1392_v57 = vmax.f32 %v1286_v54, 0.0  ;;  %4103 = vmatmul.mubr.msk.f32.gmra.mrb[114].mxu0 %vm761_vm2, %v1390_v51 }
 0x21d   :  { %v1391_v58 = vmax.f32 %v1281_v56, 0.0  ;;  %v4006_v59 = vpop.f32.mrb[54].mxu1 }
 0x21e   :  { %v1296_v60 = vadd.f32 %v4006_v59, %v4982_v10  ;;  %v1290_v61 = vpop.f32.mrb[55].mxu1 }
 0x21f   :  { %v1291_v62 = vadd.f32 %v4982_v10, %v1290_v61  ;;  %4105 = vmatprep.mubr.msk.f32.mxu0 %vm761_vm2, %v1391_v58 }
 0x220   :  { %v1394_v63 = vmax.f32 %v1296_v60, 0.0  ;;  %4106 = vmatmul.mubr.msk.f32.gmra.mrb[116].mxu0 %vm761_vm2, %v1392_v57 }
 0x221   :  { %v1393_v0 = vmax.f32 %v1291_v62, 0.0  ;;  %v4009_v1 = vpop.f32.mrb[56].mxu1 }
 0x222   :  { %v1306_v2 = vadd.f32 %v4009_v1, %v4982_v10  ;;  %v1300_v3 = vpop.f32.mrb[57].mxu1 }
 0x223   :  { %v1301_v4 = vadd.f32 %v4982_v10, %v1300_v3  ;;  %4108 = vmatprep.mubr.msk.f32.mxu0 %vm761_vm2, %v1393_v0 }
 0x224   :  { %v1396_v5 = vmax.f32 %v1306_v2, 0.0  ;;  %4109 = vmatmul.mubr.msk.f32.gmra.mrb[118].mxu0 %vm761_vm2, %v1394_v63 }
 0x225   :  { %v1395_v6 = vmax.f32 %v1301_v4, 0.0  ;;  %v4012_v7 = vpop.f32.mrb[58].mxu1 }
 0x226   :  { %v1316_v8 = vadd.f32 %v4012_v7, %v4982_v10  ;;  %v1310_v9 = vpop.f32.mrb[59].mxu1 }
 0x227   :  { %v1311_v11 = vadd.f32 %v4982_v10, %v1310_v9  ;;  %4111 = vmatprep.mubr.msk.f32.mxu0 %vm761_vm2, %v1395_v6 }
 0x228   :  { %v1398_v12 = vmax.f32 %v1316_v8, 0.0  ;;  %4112 = vmatmul.mubr.msk.f32.gmra.mrb[120].mxu0 %vm761_vm2, %v1396_v5 }
 0x229   :  { %v1397_v13 = vmax.f32 %v1311_v11, 0.0  ;;  %v4015_v14 = vpop.f32.mrb[60].mxu1 }
 0x22a   :  { %v1326_v15 = vadd.f32 %v4015_v14, %v4982_v10  ;;  %v1320_v16 = vpop.f32.mrb[61].mxu1 }
 0x22b   :  { %v1321_v17 = vadd.f32 %v4982_v10, %v1320_v16  ;;  %4114 = vmatprep.mubr.msk.f32.mxu0 %vm761_vm2, %v1397_v13 }
 0x22c   :  { %v1400_v18 = vmax.f32 %v1326_v15, 0.0  ;;  %4115 = vmatmul.mubr.msk.f32.gmra.mrb[122].mxu0 %vm761_vm2, %v1398_v12 }
 0x22d   :  { %v1399_v19 = vmax.f32 %v1321_v17, 0.0  ;;  %v4018_v20 = vpop.f32.mrb[62].mxu1 }
 0x22e   :  { %v1336_v21 = vadd.f32 %v4018_v20, %v4982_v10  ;;  %v1330_v22 = vpop.f32.mrb[63].mxu1 }
 0x22f   :  { %v1331_v23 = vadd.f32 %v4982_v10, %v1330_v22  ;;  %4117 = vmatprep.mubr.msk.f32.mxu0 %vm761_vm2, %v1399_v19 }
 0x230   :  { %v1402_v24 = vmax.f32 %v1336_v21, 0.0  ;;  %4118 = vmatmul.mubr.msk.f32.gmra.mrb[124].mxu0 %vm761_vm2, %v1400_v18 }
 0x231   :  { %v1401_v25 = vmax.f32 %v1331_v23, 0.0 }
 0x233   :  { %4120 = vmatprep.mubr.msk.f32.mxu0 %vm761_vm2, %v1401_v25 }
 0x234   :  { %4121 = vmatmul.mubr.msk.f32.gmra.mrb[126].mxu0 %vm761_vm2, %v1402_v24 }
 0x28b   :  { %v4029_v27 = vpop.f32.mrb[64].mxu0 }
 0x28c   :  { %v1678_v28 = vadd.f32 %v4029_v27, %v5121_v26  ;;  %v1672_v29 = vpop.f32.mrb[65].mxu0 }
 0x28d   :  { %v1673_v10 = vadd.f32 %v5121_v26, %v1672_v29 }
 0x28e   :  { %v1992_v32 = vmax.f32 %v1678_v28, 0.0 }
 0x28f   :  { %v1991_v30 = vmax.f32 %v1673_v10, 0.0  ;;  %v4032_v31 = vpop.f32.mrb[66].mxu0 }
 0x290   :  { %v1688_v33 = vadd.f32 %v4032_v31, %v5121_v26  ;;  %v1682_v34 = vpop.f32.mrb[67].mxu0 }
 0x291   :  { %v1683_v35 = vadd.f32 %v5121_v26, %v1682_v34  ;;  %4131 = vmatprep.mubr.msk.f32.mxu1 %vm761_vm2, %v1991_v30 }
 0x292   :  { %4132 = vmatmul.mubr.msk.f32.vlgmr.msra.gmra.mrb[64].mxu1 %vm761_vm2, %v1992_v32  ;;  %v1994_v38 = vmax.f32 %v1688_v33, 0.0 }
 0x293   :  { %v1993_v36 = vmax.f32 %v1683_v35, 0.0  ;;  %v4035_v37 = vpop.f32.mrb[68].mxu0 }
 0x294   :  { %v1698_v39 = vadd.f32 %v4035_v37, %v5121_v26  ;;  %v1692_v40 = vpop.f32.mrb[69].mxu0 }
 0x295   :  { %v1693_v41 = vadd.f32 %v5121_v26, %v1692_v40  ;;  %4134 = vmatprep.mubr.msk.f32.mxu1 %vm761_vm2, %v1993_v36 }
 0x296   :  { %4135 = vmatmul.mubr.msk.f32.gmra.mrb[66].mxu1 %vm761_vm2, %v1994_v38  ;;  %v1996_v44 = vmax.f32 %v1698_v39, 0.0 }
 0x297   :  { %v1995_v42 = vmax.f32 %v1693_v41, 0.0  ;;  %v4038_v43 = vpop.f32.mrb[70].mxu0 }
 0x298   :  { %v1708_v45 = vadd.f32 %v4038_v43, %v5121_v26  ;;  %v1702_v46 = vpop.f32.mrb[71].mxu0 }
 0x299   :  { %v1703_v47 = vadd.f32 %v5121_v26, %v1702_v46  ;;  %4137 = vmatprep.mubr.msk.f32.mxu1 %vm761_vm2, %v1995_v42 }
 0x29a   :  { %4138 = vmatmul.mubr.msk.f32.gmra.mrb[68].mxu1 %vm761_vm2, %v1996_v44  ;;  %v1998_v50 = vmax.f32 %v1708_v45, 0.0 }
 0x29b   :  { %v1997_v48 = vmax.f32 %v1703_v47, 0.0  ;;  %v4041_v49 = vpop.f32.mrb[72].mxu0 }
 0x29c   :  { %v1718_v51 = vadd.f32 %v4041_v49, %v5121_v26  ;;  %v1712_v52 = vpop.f32.mrb[73].mxu0 }
 0x29d   :  { %v1713_v53 = vadd.f32 %v5121_v26, %v1712_v52  ;;  %4140 = vmatprep.mubr.msk.f32.mxu1 %vm761_vm2, %v1997_v48 }
 0x29e   :  { %4141 = vmatmul.mubr.msk.f32.gmra.mrb[70].mxu1 %vm761_vm2, %v1998_v50  ;;  %v2000_v56 = vmax.f32 %v1718_v51, 0.0 }
 0x29f   :  { %v1999_v54 = vmax.f32 %v1713_v53, 0.0  ;;  %v4044_v55 = vpop.f32.mrb[74].mxu0 }
 0x2a0   :  { %v1728_v57 = vadd.f32 %v4044_v55, %v5121_v26  ;;  %v1722_v58 = vpop.f32.mrb[75].mxu0 }
 0x2a1   :  { %v1723_v59 = vadd.f32 %v5121_v26, %v1722_v58  ;;  %4143 = vmatprep.mubr.msk.f32.mxu1 %vm761_vm2, %v1999_v54 }
 0x2a2   :  { %4144 = vmatmul.mubr.msk.f32.gmra.mrb[72].mxu1 %vm761_vm2, %v2000_v56  ;;  %v2002_v62 = vmax.f32 %v1728_v57, 0.0 }
 0x2a3   :  { %v2001_v60 = vmax.f32 %v1723_v59, 0.0  ;;  %v4047_v61 = vpop.f32.mrb[76].mxu0 }
 0x2a4   :  { %v1738_v63 = vadd.f32 %v4047_v61, %v5121_v26  ;;  %v1732_v0 = vpop.f32.mrb[77].mxu0 }
 0x2a5   :  { %v1733_v1 = vadd.f32 %v5121_v26, %v1732_v0  ;;  %4146 = vmatprep.mubr.msk.f32.mxu1 %vm761_vm2, %v2001_v60 }
 0x2a6   :  { %4147 = vmatmul.mubr.msk.f32.gmra.mrb[74].mxu1 %vm761_vm2, %v2002_v62  ;;  %v2004_v4 = vmax.f32 %v1738_v63, 0.0 }
 0x2a7   :  { %v2003_v2 = vmax.f32 %v1733_v1, 0.0  ;;  %v4050_v3 = vpop.f32.mrb[78].mxu0 }
 0x2a8   :  { %v1748_v5 = vadd.f32 %v4050_v3, %v5121_v26  ;;  %v1742_v6 = vpop.f32.mrb[79].mxu0 }
 0x2a9   :  { %v1743_v7 = vadd.f32 %v5121_v26, %v1742_v6  ;;  %4149 = vmatprep.mubr.msk.f32.mxu1 %vm761_vm2, %v2003_v2 }
 0x2aa   :  { %4150 = vmatmul.mubr.msk.f32.gmra.mrb[76].mxu1 %vm761_vm2, %v2004_v4  ;;  %v2006_v11 = vmax.f32 %v1748_v5, 0.0 }
 0x2ab   :  { %v2005_v8 = vmax.f32 %v1743_v7, 0.0  ;;  %v4053_v9 = vpop.f32.mrb[80].mxu0 }
 0x2ac   :  { %v1758_v12 = vadd.f32 %v4053_v9, %v5121_v26  ;;  %v1752_v13 = vpop.f32.mrb[81].mxu0 }
 0x2ad   :  { %v1753_v14 = vadd.f32 %v5121_v26, %v1752_v13  ;;  %4152 = vmatprep.mubr.msk.f32.mxu1 %vm761_vm2, %v2005_v8 }
 0x2ae   :  { %4153 = vmatmul.mubr.msk.f32.gmra.mrb[78].mxu1 %vm761_vm2, %v2006_v11  ;;  %v2008_v17 = vmax.f32 %v1758_v12, 0.0 }
 0x2af   :  { %v2007_v15 = vmax.f32 %v1753_v14, 0.0  ;;  %v4056_v16 = vpop.f32.mrb[82].mxu0 }
 0x2b0   :  { %v1768_v18 = vadd.f32 %v4056_v16, %v5121_v26  ;;  %v1762_v19 = vpop.f32.mrb[83].mxu0 }
 0x2b1   :  { %v1763_v20 = vadd.f32 %v5121_v26, %v1762_v19  ;;  %4155 = vmatprep.mubr.msk.f32.mxu1 %vm761_vm2, %v2007_v15 }
 0x2b2   :  { %4156 = vmatmul.mubr.msk.f32.gmra.mrb[80].mxu1 %vm761_vm2, %v2008_v17  ;;  %v2010_v23 = vmax.f32 %v1768_v18, 0.0 }
 0x2b3   :  { %v2009_v21 = vmax.f32 %v1763_v20, 0.0  ;;  %v4059_v22 = vpop.f32.mrb[84].mxu0 }
 0x2b4   :  { %v1778_v24 = vadd.f32 %v4059_v22, %v5121_v26  ;;  %v1772_v25 = vpop.f32.mrb[85].mxu0 }
 0x2b5   :  { %v1773_v27 = vadd.f32 %v5121_v26, %v1772_v25  ;;  %4158 = vmatprep.mubr.msk.f32.mxu1 %vm761_vm2, %v2009_v21 }
 0x2b6   :  { %4159 = vmatmul.mubr.msk.f32.gmra.mrb[82].mxu1 %vm761_vm2, %v2010_v23  ;;  %v2012_v10 = vmax.f32 %v1778_v24, 0.0 }
 0x2b7   :  { %v2011_v28 = vmax.f32 %v1773_v27, 0.0  ;;  %v4062_v29 = vpop.f32.mrb[86].mxu0 }
 0x2b8   :  { %v1788_v30 = vadd.f32 %v4062_v29, %v5121_v26  ;;  %v1782_v31 = vpop.f32.mrb[87].mxu0 }
 0x2b9   :  { %v1783_v32 = vadd.f32 %v5121_v26, %v1782_v31  ;;  %4161 = vmatprep.mubr.msk.f32.mxu1 %vm761_vm2, %v2011_v28 }
 0x2ba   :  { %4162 = vmatmul.mubr.msk.f32.gmra.mrb[84].mxu1 %vm761_vm2, %v2012_v10  ;;  %v2014_v35 = vmax.f32 %v1788_v30, 0.0 }
 0x2bb   :  { %v2013_v33 = vmax.f32 %v1783_v32, 0.0  ;;  %v4065_v34 = vpop.f32.mrb[88].mxu0 }
 0x2bc   :  { %v1798_v36 = vadd.f32 %v4065_v34, %v5121_v26  ;;  %v1792_v37 = vpop.f32.mrb[89].mxu0 }
 0x2bd   :  { %v1793_v38 = vadd.f32 %v5121_v26, %v1792_v37  ;;  %4164 = vmatprep.mubr.msk.f32.mxu1 %vm761_vm2, %v2013_v33 }
 0x2be   :  { %4165 = vmatmul.mubr.msk.f32.gmra.mrb[86].mxu1 %vm761_vm2, %v2014_v35  ;;  %v2016_v41 = vmax.f32 %v1798_v36, 0.0 }
 0x2bf   :  { %v2015_v39 = vmax.f32 %v1793_v38, 0.0  ;;  %v4068_v40 = vpop.f32.mrb[90].mxu0 }
 0x2c0   :  { %v1808_v42 = vadd.f32 %v4068_v40, %v5121_v26  ;;  %v1802_v43 = vpop.f32.mrb[91].mxu0 }
 0x2c1   :  { %v1803_v44 = vadd.f32 %v5121_v26, %v1802_v43  ;;  %4167 = vmatprep.mubr.msk.f32.mxu1 %vm761_vm2, %v2015_v39 }
 0x2c2   :  { %4168 = vmatmul.mubr.msk.f32.gmra.mrb[88].mxu1 %vm761_vm2, %v2016_v41  ;;  %v2018_v47 = vmax.f32 %v1808_v42, 0.0 }
 0x2c3   :  { %v2017_v45 = vmax.f32 %v1803_v44, 0.0  ;;  %v4071_v46 = vpop.f32.mrb[92].mxu0 }
 0x2c4   :  { %v1818_v48 = vadd.f32 %v4071_v46, %v5121_v26  ;;  %v1812_v49 = vpop.f32.mrb[93].mxu0 }
 0x2c5   :  { %v1813_v50 = vadd.f32 %v5121_v26, %v1812_v49  ;;  %4170 = vmatprep.mubr.msk.f32.mxu1 %vm761_vm2, %v2017_v45 }
 0x2c6   :  { %4171 = vmatmul.mubr.msk.f32.gmra.mrb[90].mxu1 %vm761_vm2, %v2018_v47  ;;  %v2020_v53 = vmax.f32 %v1818_v48, 0.0 }
 0x2c7   :  { %v2019_v51 = vmax.f32 %v1813_v50, 0.0  ;;  %v4074_v52 = vpop.f32.mrb[94].mxu0 }
 0x2c8   :  { %v1828_v54 = vadd.f32 %v4074_v52, %v5121_v26  ;;  %v1822_v55 = vpop.f32.mrb[95].mxu0 }
 0x2c9   :  { %v1823_v56 = vadd.f32 %v5121_v26, %v1822_v55  ;;  %4173 = vmatprep.mubr.msk.f32.mxu1 %vm761_vm2, %v2019_v51 }
 0x2ca   :  { %4174 = vmatmul.mubr.msk.f32.gmra.mrb[92].mxu1 %vm761_vm2, %v2020_v53  ;;  %v2022_v59 = vmax.f32 %v1828_v54, 0.0 }
 0x2cb   :  { %v2021_v57 = vmax.f32 %v1823_v56, 0.0  ;;  %v4077_v58 = vpop.f32.mrb[96].mxu0 }
 0x2cc   :  { %v1838_v60 = vadd.f32 %v4077_v58, %v5121_v26  ;;  %v1832_v61 = vpop.f32.mrb[97].mxu0 }
 0x2cd   :  { %v1833_v62 = vadd.f32 %v5121_v26, %v1832_v61  ;;  %4176 = vmatprep.mubr.msk.f32.mxu1 %vm761_vm2, %v2021_v57 }
 0x2ce   :  { %4177 = vmatmul.mubr.msk.f32.gmra.mrb[94].mxu1 %vm761_vm2, %v2022_v59  ;;  %v2024_v1 = vmax.f32 %v1838_v60, 0.0 }
 0x2cf   :  { %v2023_v63 = vmax.f32 %v1833_v62, 0.0  ;;  %v4080_v0 = vpop.f32.mrb[98].mxu0 }
 0x2d0   :  { %v1848_v2 = vadd.f32 %v4080_v0, %v5121_v26  ;;  %v1842_v3 = vpop.f32.mrb[99].mxu0 }
 0x2d1   :  { %v1843_v4 = vadd.f32 %v5121_v26, %v1842_v3  ;;  %4179 = vmatprep.mubr.msk.f32.mxu1 %vm761_vm2, %v2023_v63 }
 0x2d2   :  { %4180 = vmatmul.mubr.msk.f32.gmra.mrb[96].mxu1 %vm761_vm2, %v2024_v1  ;;  %v2026_v7 = vmax.f32 %v1848_v2, 0.0 }
 0x2d3   :  { %v2025_v5 = vmax.f32 %v1843_v4, 0.0  ;;  %v4083_v6 = vpop.f32.mrb[100].mxu0 }
 0x2d4   :  { %v1858_v8 = vadd.f32 %v4083_v6, %v5121_v26  ;;  %v1852_v9 = vpop.f32.mrb[101].mxu0 }
 0x2d5   :  { %v1853_v11 = vadd.f32 %v5121_v26, %v1852_v9  ;;  %4182 = vmatprep.mubr.msk.f32.mxu1 %vm761_vm2, %v2025_v5 }
 0x2d6   :  { %4183 = vmatmul.mubr.msk.f32.gmra.mrb[98].mxu1 %vm761_vm2, %v2026_v7  ;;  %v2028_v14 = vmax.f32 %v1858_v8, 0.0 }
 0x2d7   :  { %v2027_v12 = vmax.f32 %v1853_v11, 0.0  ;;  %v4086_v13 = vpop.f32.mrb[102].mxu0 }
 0x2d8   :  { %v1868_v15 = vadd.f32 %v4086_v13, %v5121_v26  ;;  %v1862_v16 = vpop.f32.mrb[103].mxu0 }
 0x2d9   :  { %v1863_v17 = vadd.f32 %v5121_v26, %v1862_v16  ;;  %4185 = vmatprep.mubr.msk.f32.mxu1 %vm761_vm2, %v2027_v12 }
 0x2da   :  { %4186 = vmatmul.mubr.msk.f32.gmra.mrb[100].mxu1 %vm761_vm2, %v2028_v14  ;;  %v2030_v20 = vmax.f32 %v1868_v15, 0.0 }
 0x2db   :  { %v2029_v18 = vmax.f32 %v1863_v17, 0.0  ;;  %v4089_v19 = vpop.f32.mrb[104].mxu0 }
 0x2dc   :  { %v1878_v21 = vadd.f32 %v4089_v19, %v5121_v26  ;;  %v1872_v22 = vpop.f32.mrb[105].mxu0 }
 0x2dd   :  { %v1873_v23 = vadd.f32 %v5121_v26, %v1872_v22  ;;  %4188 = vmatprep.mubr.msk.f32.mxu1 %vm761_vm2, %v2029_v18 }
 0x2de   :  { %4189 = vmatmul.mubr.msk.f32.gmra.mrb[102].mxu1 %vm761_vm2, %v2030_v20  ;;  %v2032_v27 = vmax.f32 %v1878_v21, 0.0 }
 0x2df   :  { %v2031_v24 = vmax.f32 %v1873_v23, 0.0  ;;  %v4092_v25 = vpop.f32.mrb[106].mxu0 }
 0x2e0   :  { %v1888_v28 = vadd.f32 %v4092_v25, %v5121_v26  ;;  %v1882_v29 = vpop.f32.mrb[107].mxu0 }
 0x2e1   :  { %v1883_v10 = vadd.f32 %v5121_v26, %v1882_v29  ;;  %4191 = vmatprep.mubr.msk.f32.mxu1 %vm761_vm2, %v2031_v24 }
 0x2e2   :  { %4192 = vmatmul.mubr.msk.f32.gmra.mrb[104].mxu1 %vm761_vm2, %v2032_v27  ;;  %v2034_v32 = vmax.f32 %v1888_v28, 0.0 }
 0x2e3   :  { %v2033_v30 = vmax.f32 %v1883_v10, 0.0  ;;  %v4095_v31 = vpop.f32.mrb[108].mxu0  ;;  %v5254_v10 = vld [vmem:[%s6032_s8] ss:$0 sm:$0xff] }
 0x2e4   :  { %v1898_v33 = vadd.f32 %v4095_v31, %v5121_v26  ;;  %v1892_v34 = vpop.f32.mrb[109].mxu0 }
 0x2e5   :  { %v1893_v35 = vadd.f32 %v5121_v26, %v1892_v34  ;;  %4194 = vmatprep.mubr.msk.f32.mxu1 %vm761_vm2, %v2033_v30 }
 0x2e6   :  { %4195 = vmatmul.mubr.msk.f32.gmra.mrb[106].mxu1 %vm761_vm2, %v2034_v32  ;;  %v2036_v38 = vmax.f32 %v1898_v33, 0.0 }
 0x2e7   :  { %v2035_v36 = vmax.f32 %v1893_v35, 0.0  ;;  %v4098_v37 = vpop.f32.mrb[110].mxu0 }
 0x2e8   :  { %v1908_v39 = vadd.f32 %v4098_v37, %v5121_v26  ;;  %v1902_v40 = vpop.f32.mrb[111].mxu0 }
 0x2e9   :  { %v1903_v41 = vadd.f32 %v5121_v26, %v1902_v40  ;;  %4197 = vmatprep.mubr.msk.f32.mxu1 %vm761_vm2, %v2035_v36 }
 0x2ea   :  { %4198 = vmatmul.mubr.msk.f32.gmra.mrb[108].mxu1 %vm761_vm2, %v2036_v38  ;;  %v2038_v44 = vmax.f32 %v1908_v39, 0.0 }
 0x2eb   :  { %v2037_v42 = vmax.f32 %v1903_v41, 0.0  ;;  %v4101_v43 = vpop.f32.mrb[112].mxu0 }
 0x2ec   :  { %v1918_v45 = vadd.f32 %v4101_v43, %v5121_v26  ;;  %v1912_v46 = vpop.f32.mrb[113].mxu0 }
 0x2ed   :  { %v1913_v47 = vadd.f32 %v5121_v26, %v1912_v46  ;;  %4200 = vmatprep.mubr.msk.f32.mxu1 %vm761_vm2, %v2037_v42 }
 0x2ee   :  { %4201 = vmatmul.mubr.msk.f32.gmra.mrb[110].mxu1 %vm761_vm2, %v2038_v44  ;;  %v2040_v50 = vmax.f32 %v1918_v45, 0.0 }
 0x2ef   :  { %v2039_v48 = vmax.f32 %v1913_v47, 0.0  ;;  %v4104_v49 = vpop.f32.mrb[114].mxu0 }
 0x2f0   :  { %v1928_v51 = vadd.f32 %v4104_v49, %v5121_v26  ;;  %v1922_v52 = vpop.f32.mrb[115].mxu0 }
 0x2f1   :  { %v1923_v53 = vadd.f32 %v5121_v26, %v1922_v52  ;;  %4203 = vmatprep.mubr.msk.f32.mxu1 %vm761_vm2, %v2039_v48 }
 0x2f2   :  { %4204 = vmatmul.mubr.msk.f32.gmra.mrb[112].mxu1 %vm761_vm2, %v2040_v50  ;;  %v2042_v56 = vmax.f32 %v1928_v51, 0.0 }
 0x2f3   :  { %v2041_v54 = vmax.f32 %v1923_v53, 0.0  ;;  %v4107_v55 = vpop.f32.mrb[116].mxu0 }
 0x2f4   :  { %v1938_v57 = vadd.f32 %v4107_v55, %v5121_v26  ;;  %v1932_v58 = vpop.f32.mrb[117].mxu0 }
 0x2f5   :  { %v1933_v59 = vadd.f32 %v5121_v26, %v1932_v58  ;;  %4206 = vmatprep.mubr.msk.f32.mxu1 %vm761_vm2, %v2041_v54 }
 0x2f6   :  { %4207 = vmatmul.mubr.msk.f32.gmra.mrb[114].mxu1 %vm761_vm2, %v2042_v56  ;;  %v2044_v62 = vmax.f32 %v1938_v57, 0.0 }
 0x2f7   :  { %v2043_v60 = vmax.f32 %v1933_v59, 0.0  ;;  %v4110_v61 = vpop.f32.mrb[118].mxu0 }
 0x2f8   :  { %v1948_v63 = vadd.f32 %v4110_v61, %v5121_v26  ;;  %v1942_v0 = vpop.f32.mrb[119].mxu0 }
 0x2f9   :  { %v1943_v1 = vadd.f32 %v5121_v26, %v1942_v0  ;;  %4209 = vmatprep.mubr.msk.f32.mxu1 %vm761_vm2, %v2043_v60 }
 0x2fa   :  { %4210 = vmatmul.mubr.msk.f32.gmra.mrb[116].mxu1 %vm761_vm2, %v2044_v62  ;;  %v2046_v4 = vmax.f32 %v1948_v63, 0.0 }
 0x2fb   :  { %v2045_v2 = vmax.f32 %v1943_v1, 0.0  ;;  %v4113_v3 = vpop.f32.mrb[120].mxu0 }
 0x2fc   :  { %v1958_v5 = vadd.f32 %v4113_v3, %v5121_v26  ;;  %v1952_v6 = vpop.f32.mrb[121].mxu0 }
 0x2fd   :  { %v1953_v7 = vadd.f32 %v5121_v26, %v1952_v6  ;;  %4212 = vmatprep.mubr.msk.f32.mxu1 %vm761_vm2, %v2045_v2 }
 0x2fe   :  { %4213 = vmatmul.mubr.msk.f32.gmra.mrb[118].mxu1 %vm761_vm2, %v2046_v4  ;;  %v2048_v11 = vmax.f32 %v1958_v5, 0.0 }
 0x2ff   :  { %v2047_v8 = vmax.f32 %v1953_v7, 0.0  ;;  %v4116_v9 = vpop.f32.mrb[122].mxu0 }
 0x300   :  { %v1968_v12 = vadd.f32 %v4116_v9, %v5121_v26  ;;  %v1962_v13 = vpop.f32.mrb[123].mxu0 }
 0x301   :  { %v1963_v14 = vadd.f32 %v5121_v26, %v1962_v13  ;;  %4215 = vmatprep.mubr.msk.f32.mxu1 %vm761_vm2, %v2047_v8 }
 0x302   :  { %4216 = vmatmul.mubr.msk.f32.gmra.mrb[120].mxu1 %vm761_vm2, %v2048_v11  ;;  %v2050_v17 = vmax.f32 %v1968_v12, 0.0 }
 0x303   :  { %v2049_v15 = vmax.f32 %v1963_v14, 0.0  ;;  %v4119_v16 = vpop.f32.mrb[124].mxu0 }
 0x304   :  { %v1978_v18 = vadd.f32 %v4119_v16, %v5121_v26  ;;  %v1972_v19 = vpop.f32.mrb[125].mxu0 }
 0x305   :  { %v1973_v20 = vadd.f32 %v5121_v26, %v1972_v19  ;;  %4218 = vmatprep.mubr.msk.f32.mxu1 %vm761_vm2, %v2049_v15 }
 0x306   :  { %4219 = vmatmul.mubr.msk.f32.gmra.mrb[122].mxu1 %vm761_vm2, %v2050_v17  ;;  %v2052_v23 = vmax.f32 %v1978_v18, 0.0 }
 0x307   :  { %v2051_v21 = vmax.f32 %v1973_v20, 0.0  ;;  %v4122_v22 = vpop.f32.mrb[126].mxu0 }
 0x308   :  { %v1988_v24 = vadd.f32 %v4122_v22, %v5121_v26  ;;  %v1982_v25 = vpop.f32.mrb[127].mxu0 }
 0x309   :  { %v1983_v27 = vadd.f32 %v5121_v26, %v1982_v25  ;;  %4221 = vmatprep.mubr.msk.f32.mxu1 %vm761_vm2, %v2051_v21 }
 0x30a   :  { %4222 = vmatmul.mubr.msk.f32.gmra.mrb[124].mxu1 %vm761_vm2, %v2052_v23  ;;  %v2054_v29 = vmax.f32 %v1988_v24, 0.0 }
 0x30b   :  { %v2053_v28 = vmax.f32 %v1983_v27, 0.0 }
 0x30d   :  { %4224 = vmatprep.mubr.msk.f32.mxu1 %vm761_vm2, %v2053_v28 }
 0x30e   :  { %4225 = vmatmul.mubr.msk.f32.gmra.mrb[126].mxu1 %vm761_vm2, %v2054_v29 }
 0x365   :  { %v4133_v30 = vpop.f32.mrb[64].mxu1 }
 0x366   :  { %v5257_v31 = vadd.f32 %v4133_v30, %v5254_v10  ;;  %v2324_v26 = vpop.f32.mrb[65].mxu1 }
 0x367   :  { %v5261_v33 = vadd.f32 %v5254_v10, %v2324_v26 }
 0x368   :  { %2645 = vmax.xlane.f32.xlu0 %v5257_v31 }
 0x369   :  { %v4136_v32 = vpop.f32.mrb[66].mxu1 }
 0x36a   :  { %v5264_v34 = vadd.f32 %v4136_v32, %v5254_v10  ;;  %v2334_v35 = vpop.f32.mrb[67].mxu1 }
 0x36b   :  { %v5269_v37 = vadd.f32 %v5254_v10, %v2334_v35 }
 0x36c   :  { %2649 = vmax.xlane.f32.xlu1 %v5264_v34  ;;  %2643 = vmax.xlane.f32.xlu0 %v5261_v33 }
 0x36d   :  { %v4139_v36 = vpop.f32.mrb[68].mxu1 }
 0x36e   :  { %v2344_v38 = vpop.f32.mrb[69].mxu1  ;;  %v5277_v41 = vadd.f32 %v4139_v36, %v5254_v10 }
 0x36f   :  { %v5272_v39 = vadd.f32 %v5254_v10, %v2344_v38 }
 0x370   :  { %2647 = vmax.xlane.f32.xlu1 %v5269_v37 }
 0x371   :  { %v4142_v40 = vpop.f32.mrb[70].mxu1  ;;  %2651 = vmax.xlane.f32.xlu0 %v5272_v39 }
 0x372   :  { %v2354_v42 = vpop.f32.mrb[71].mxu1  ;;  %v5285_v45 = vadd.f32 %v4142_v40, %v5254_v10 }
 0x373   :  { %v5280_v43 = vadd.f32 %v5254_v10, %v2354_v42 }
 0x374   :  { %2653 = vmax.xlane.f32.xlu1 %v5277_v41 }
 0x375   :  { %v4145_v44 = vpop.f32.mrb[72].mxu1  ;;  %2655 = vmax.xlane.f32.xlu0 %v5280_v43 }
 0x376   :  { %v2364_v46 = vpop.f32.mrb[73].mxu1  ;;  %v5293_v49 = vadd.f32 %v4145_v44, %v5254_v10 }
 0x377   :  { %v5288_v47 = vadd.f32 %v5254_v10, %v2364_v46 }
 0x378   :  { %2657 = vmax.xlane.f32.xlu1 %v5285_v45 }
 0x379   :  { %v4148_v48 = vpop.f32.mrb[74].mxu1  ;;  %2659 = vmax.xlane.f32.xlu0 %v5288_v47 }
 0x37a   :  { %v2374_v50 = vpop.f32.mrb[75].mxu1  ;;  %v5301_v53 = vadd.f32 %v4148_v48, %v5254_v10 }
 0x37b   :  { %v5296_v51 = vadd.f32 %v5254_v10, %v2374_v50 }
 0x37c   :  { %2661 = vmax.xlane.f32.xlu1 %v5293_v49 }
 0x37d   :  { %v4151_v52 = vpop.f32.mrb[76].mxu1  ;;  %2663 = vmax.xlane.f32.xlu0 %v5296_v51 }
 0x37e   :  { %v2384_v54 = vpop.f32.mrb[77].mxu1  ;;  %v5309_v57 = vadd.f32 %v4151_v52, %v5254_v10 }
 0x37f   :  { %v5304_v55 = vadd.f32 %v5254_v10, %v2384_v54 }
 0x380   :  { %2665 = vmax.xlane.f32.xlu1 %v5301_v53 }
 0x381   :  { %v4154_v56 = vpop.f32.mrb[78].mxu1  ;;  %2667 = vmax.xlane.f32.xlu0 %v5304_v55 }
 0x382   :  { %v2394_v58 = vpop.f32.mrb[79].mxu1  ;;  %v5317_v61 = vadd.f32 %v4154_v56, %v5254_v10 }
 0x383   :  { %v5312_v59 = vadd.f32 %v5254_v10, %v2394_v58 }
 0x384   :  { %2669 = vmax.xlane.f32.xlu1 %v5309_v57 }
 0x385   :  { %v4157_v60 = vpop.f32.mrb[80].mxu1  ;;  %2671 = vmax.xlane.f32.xlu0 %v5312_v59 }
 0x386   :  { %v2404_v62 = vpop.f32.mrb[81].mxu1  ;;  %v5325_v1 = vadd.f32 %v4157_v60, %v5254_v10 }
 0x387   :  { %v5320_v63 = vadd.f32 %v5254_v10, %v2404_v62 }
 0x388   :  { %2673 = vmax.xlane.f32.xlu1 %v5317_v61 }
 0x389   :  { %v4160_v0 = vpop.f32.mrb[82].mxu1  ;;  %2675 = vmax.xlane.f32.xlu0 %v5320_v63 }
 0x38a   :  { %v2414_v2 = vpop.f32.mrb[83].mxu1  ;;  %v5333_v5 = vadd.f32 %v4160_v0, %v5254_v10 }
 0x38b   :  { %v5328_v3 = vadd.f32 %v5254_v10, %v2414_v2 }
 0x38c   :  { %2677 = vmax.xlane.f32.xlu1 %v5325_v1 }
 0x38d   :  { %v4163_v4 = vpop.f32.mrb[84].mxu1  ;;  %2679 = vmax.xlane.f32.xlu0 %v5328_v3 }
 0x38e   :  { %v2424_v6 = vpop.f32.mrb[85].mxu1  ;;  %v5341_v9 = vadd.f32 %v4163_v4, %v5254_v10 }
 0x38f   :  { %v5336_v7 = vadd.f32 %v5254_v10, %v2424_v6 }
 0x390   :  { %2681 = vmax.xlane.f32.xlu1 %v5333_v5 }
 0x391   :  { %v4166_v8 = vpop.f32.mrb[86].mxu1  ;;  %2683 = vmax.xlane.f32.xlu0 %v5336_v7 }
 0x392   :  { %v2434_v11 = vpop.f32.mrb[87].mxu1  ;;  %v5349_v14 = vadd.f32 %v4166_v8, %v5254_v10 }
 0x393   :  { %v5344_v12 = vadd.f32 %v5254_v10, %v2434_v11 }
 0x394   :  { %2685 = vmax.xlane.f32.xlu1 %v5341_v9 }
 0x395   :  { %v4169_v13 = vpop.f32.mrb[88].mxu1  ;;  %2687 = vmax.xlane.f32.xlu0 %v5344_v12 }
 0x396   :  { %v2444_v15 = vpop.f32.mrb[89].mxu1  ;;  %v5357_v18 = vadd.f32 %v4169_v13, %v5254_v10 }
 0x397   :  { %v5352_v16 = vadd.f32 %v5254_v10, %v2444_v15 }
 0x398   :  { %2689 = vmax.xlane.f32.xlu1 %v5349_v14 }
 0x399   :  { %v4172_v17 = vpop.f32.mrb[90].mxu1  ;;  %2691 = vmax.xlane.f32.xlu0 %v5352_v16 }
 0x39a   :  { %v2454_v19 = vpop.f32.mrb[91].mxu1  ;;  %v5365_v22 = vadd.f32 %v4172_v17, %v5254_v10 }
 0x39b   :  { %v5360_v20 = vadd.f32 %v5254_v10, %v2454_v19 }
 0x39c   :  { %2693 = vmax.xlane.f32.xlu1 %v5357_v18 }
 0x39d   :  { %v4175_v21 = vpop.f32.mrb[92].mxu1  ;;  %2695 = vmax.xlane.f32.xlu0 %v5360_v20 }
 0x39e   :  { %v2464_v23 = vpop.f32.mrb[93].mxu1  ;;  %v5373_v27 = vadd.f32 %v4175_v21, %v5254_v10 }
 0x39f   :  { %v5368_v24 = vadd.f32 %v5254_v10, %v2464_v23 }
 0x3a0   :  { %2697 = vmax.xlane.f32.xlu1 %v5365_v22 }
 0x3a1   :  { %v4178_v25 = vpop.f32.mrb[94].mxu1  ;;  %2699 = vmax.xlane.f32.xlu0 %v5368_v24 }
 0x3a2   :  { %v2474_v28 = vpop.f32.mrb[95].mxu1  ;;  %v5381_v26 = vadd.f32 %v4178_v25, %v5254_v10 }
 0x3a3   :  { %v5376_v29 = vadd.f32 %v5254_v10, %v2474_v28 }
 0x3a4   :  { %2701 = vmax.xlane.f32.xlu1 %v5373_v27 }
 0x3a5   :  { %v4181_v30 = vpop.f32.mrb[96].mxu1  ;;  %2703 = vmax.xlane.f32.xlu0 %v5376_v29 }
 0x3a6   :  { %v2484_v32 = vpop.f32.mrb[97].mxu1  ;;  %v5389_v38 = vadd.f32 %v4181_v30, %v5254_v10 }
 0x3a7   :  { %v5384_v35 = vadd.f32 %v5254_v10, %v2484_v32 }
 0x3a8   :  { %2705 = vmax.xlane.f32.xlu1 %v5381_v26 }
 0x3a9   :  { %v4184_v36 = vpop.f32.mrb[98].mxu1  ;;  %2707 = vmax.xlane.f32.xlu0 %v5384_v35 }
 0x3aa   :  { %v2494_v40 = vpop.f32.mrb[99].mxu1  ;;  %v5397_v46 = vadd.f32 %v4184_v36, %v5254_v10 }
 0x3ab   :  { %v5392_v42 = vadd.f32 %v5254_v10, %v2494_v40 }
 0x3ac   :  { %2709 = vmax.xlane.f32.xlu1 %v5389_v38 }
 0x3ad   :  { %v4187_v44 = vpop.f32.mrb[100].mxu1  ;;  %2711 = vmax.xlane.f32.xlu0 %v5392_v42 }
 0x3ae   :  { %v2504_v48 = vpop.f32.mrb[101].mxu1  ;;  %v5405_v54 = vadd.f32 %v4187_v44, %v5254_v10 }
 0x3af   :  { %v5400_v50 = vadd.f32 %v5254_v10, %v2504_v48 }
 0x3b0   :  { %2713 = vmax.xlane.f32.xlu1 %v5397_v46 }
 0x3b1   :  { %v4190_v52 = vpop.f32.mrb[102].mxu1  ;;  %2715 = vmax.xlane.f32.xlu0 %v5400_v50 }
 0x3b2   :  { %v2514_v56 = vpop.f32.mrb[103].mxu1  ;;  %v5413_v62 = vadd.f32 %v4190_v52, %v5254_v10 }
 0x3b3   :  { %v5408_v58 = vadd.f32 %v5254_v10, %v2514_v56 }
 0x3b4   :  { %2717 = vmax.xlane.f32.xlu1 %v5405_v54 }
 0x3b5   :  { %v4193_v60 = vpop.f32.mrb[104].mxu1  ;;  %2719 = vmax.xlane.f32.xlu0 %v5408_v58 }
 0x3b6   :  { %v2524_v0 = vpop.f32.mrb[105].mxu1  ;;  %v5421_v6 = vadd.f32 %v4193_v60, %v5254_v10 }
 0x3b7   :  { %v5416_v2 = vadd.f32 %v5254_v10, %v2524_v0 }
 0x3b8   :  { %2721 = vmax.xlane.f32.xlu1 %v5413_v62 }
 0x3b9   :  { %v4196_v4 = vpop.f32.mrb[106].mxu1  ;;  %2723 = vmax.xlane.f32.xlu0 %v5416_v2 }
 0x3ba   :  { %v2534_v8 = vpop.f32.mrb[107].mxu1  ;;  %v5429_v15 = vadd.f32 %v4196_v4, %v5254_v10 }
 0x3bb   :  { %v5424_v11 = vadd.f32 %v5254_v10, %v2534_v8 }
 0x3bc   :  { %2725 = vmax.xlane.f32.xlu1 %v5421_v6 }
 0x3bd   :  { %v4199_v13 = vpop.f32.mrb[108].mxu1  ;;  %2727 = vmax.xlane.f32.xlu0 %v5424_v11 }
 0x3be   :  { %v2544_v17 = vpop.f32.mrb[109].mxu1  ;;  %v5437_v23 = vadd.f32 %v4199_v13, %v5254_v10 }
 0x3bf   :  { %v5432_v19 = vadd.f32 %v5254_v10, %v2544_v17 }
 0x3c0   :  { %2729 = vmax.xlane.f32.xlu1 %v5429_v15 }
 0x3c1   :  { %v4202_v21 = vpop.f32.mrb[110].mxu1  ;;  %2731 = vmax.xlane.f32.xlu0 %v5432_v19 }
 0x3c2   :  { %v2554_v25 = vpop.f32.mrb[111].mxu1  ;;  %v5445_v32 = vadd.f32 %v4202_v21, %v5254_v10 }
 0x3c3   :  { %v5440_v28 = vadd.f32 %v5254_v10, %v2554_v25 }
 0x3c4   :  { %2733 = vmax.xlane.f32.xlu1 %v5437_v23 }
 0x3c5   :  { %v4205_v30 = vpop.f32.mrb[112].mxu1  ;;  %2735 = vmax.xlane.f32.xlu0 %v5440_v28 }
 0x3c6   :  { %v2564_v36 = vpop.f32.mrb[113].mxu1  ;;  %v5453_v48 = vadd.f32 %v4205_v30, %v5254_v10 }
 0x3c7   :  { %v5448_v40 = vadd.f32 %v5254_v10, %v2564_v36 }
 0x3c8   :  { %2737 = vmax.xlane.f32.xlu1 %v5445_v32 }
 0x3c9   :  { %v4208_v44 = vpop.f32.mrb[114].mxu1  ;;  %2739 = vmax.xlane.f32.xlu0 %v5448_v40 }
 0x3ca   :  { %v2574_v52 = vpop.f32.mrb[115].mxu1  ;;  %v5461_v0 = vadd.f32 %v4208_v44, %v5254_v10 }
 0x3cb   :  { %v5456_v56 = vadd.f32 %v5254_v10, %v2574_v52 }
 0x3cc   :  { %2741 = vmax.xlane.f32.xlu1 %v5453_v48  ;;  %6059 = vst [vmem:[#allocation3_spill] sm:$0xff] %v5461_v0 }
 0x3cd   :  { %6058 = vst [vmem:[#allocation2_spill] sm:$0xff] %v5456_v56  ;;  %v4211_v60 = vpop.f32.mrb[116].mxu1  ;;  %2743 = vmax.xlane.f32.xlu0 %v5456_v56 }
 0x3ce   :  { %v2584_v4 = vpop.f32.mrb[117].mxu1  ;;  %v5469_v17 = vadd.f32 %v4211_v60, %v5254_v10 }
 0x3cf   :  { %v5464_v8 = vadd.f32 %v5254_v10, %v2584_v4 }
 0x3d0   :  { %2745 = vmax.xlane.f32.xlu1 %v5461_v0  ;;  %6061 = vst [vmem:[#allocation5_spill] sm:$0xff] %v5469_v17 }
 0x3d1   :  { %6060 = vst [vmem:[#allocation4_spill] sm:$0xff] %v5464_v8  ;;  %v4214_v13 = vpop.f32.mrb[118].mxu1  ;;  %2747 = vmax.xlane.f32.xlu0 %v5464_v8 }
 0x3d2   :  { %v2594_v21 = vpop.f32.mrb[119].mxu1  ;;  %v5477_v36 = vadd.f32 %v4214_v13, %v5254_v10 }
 0x3d3   :  { %v5472_v25 = vadd.f32 %v5254_v10, %v2594_v21 }
 0x3d4   :  { %2749 = vmax.xlane.f32.xlu1 %v5469_v17  ;;  %6063 = vst [vmem:[#allocation7_spill] sm:$0xff] %v5477_v36 }
 0x3d5   :  { %6062 = vst [vmem:[#allocation6_spill] sm:$0xff] %v5472_v25  ;;  %v4217_v30 = vpop.f32.mrb[120].mxu1  ;;  %2751 = vmax.xlane.f32.xlu0 %v5472_v25 }
 0x3d6   :  { %v2604_v44 = vpop.f32.mrb[121].mxu1  ;;  %v5485_v4 = vadd.f32 %v4217_v30, %v5254_v10 }
 0x3d7   :  { %v5480_v52 = vadd.f32 %v5254_v10, %v2604_v44 }
 0x3d8   :  { %2753 = vmax.xlane.f32.xlu1 %v5477_v36  ;;  %6065 = vst [vmem:[#allocation9_spill] sm:$0xff] %v5485_v4 }
 0x3d9   :  { %6064 = vst [vmem:[#allocation8_spill] sm:$0xff] %v5480_v52  ;;  %v4220_v60 = vpop.f32.mrb[122].mxu1  ;;  %2755 = vmax.xlane.f32.xlu0 %v5480_v52 }
 0x3da   :  { %v2614_v21 = vpop.f32.mrb[123].mxu1  ;;  %v5493_v44 = vadd.f32 %v4220_v60, %v5254_v10 }
 0x3db   :  { %v5488_v17 = vadd.f32 %v5254_v10, %v2614_v21 }
 0x3dc   :  { %2757 = vmax.xlane.f32.xlu1 %v5485_v4  ;;  %6067 = vst [vmem:[#allocation11_spill] sm:$0xff] %v5493_v44 }
 0x3dd   :  { %6066 = vst [vmem:[#allocation10_spill] sm:$0xff] %v5488_v17  ;;  %v4223_v13 = vpop.f32.mrb[124].mxu1  ;;  %2759 = vmax.xlane.f32.xlu0 %v5488_v17 }
 0x3de   :  { %v2624_v25 = vpop.f32.mrb[125].mxu1  ;;  %v5501_v21 = vadd.f32 %v4223_v13, %v5254_v10 }
 0x3df   :  { %v5496_v36 = vadd.f32 %v5254_v10, %v2624_v25 }
 0x3e0   :  { %2761 = vmax.xlane.f32.xlu1 %v5493_v44  ;;  %6069 = vst [vmem:[#allocation13_spill] sm:$0xff] %v5501_v21 }
 0x3e1   :  { %6068 = vst [vmem:[#allocation12_spill] sm:$0xff] %v5496_v36  ;;  %v4226_v30 = vpop.f32.mrb[126].mxu1  ;;  %2763 = vmax.xlane.f32.xlu0 %v5496_v36 }
 0x3e2   :  { %v2634_v52 = vpop.f32.mrb[127].mxu1  ;;  %v5509_v60 = vadd.f32 %v4226_v30, %v5254_v10 }
 0x3e3   :  { %v5504_v4 = vadd.f32 %v5254_v10, %v2634_v52 }
 0x3e4   :  { %2765 = vmax.xlane.f32.xlu1 %v5501_v21  ;;  %6071 = vst [vmem:[#allocation15_spill] sm:$0xff] %v5509_v60 }
 0x3e5   :  { %6070 = vst [vmem:[#allocation14_spill] sm:$0xff] %v5504_v4  ;;  %2767 = vmax.xlane.f32.xlu0 %v5504_v4 }
 0x3e8   :  { %2769 = vmax.xlane.f32.xlu1 %v5509_v60 }
 0x3f5   :  { %v2646_v25 = vpop.xlane.xlu0 %2645 }
 0x3f6   :  { %v2772_v44 = vsub.f32 %v5257_v31, %v2646_v25 }
 0x3f8   :  { %v2837_v36 = vmul.f32 1.442695, %v2772_v44 }
 0x3f9   :  { %v2650_v17 = vpop.xlane.xlu1 %2649  ;;  %v2644_v13 = vpop.xlane.xlu0 %2643 }
 0x3fa   :  { %4251 = vpow2.f32 %v2837_v36  ;;  %v2774_v8 = vsub.f32 %v5264_v34, %v2650_v17  ;;  %v2771_v52 = vsub.f32 %v5261_v33, %v2644_v13 }
 0x3fc   :  { %v2841_v0 = vmul.f32 1.442695, %v2774_v8  ;;  %v2835_v21 = vmul.f32 1.442695, %v2771_v52 }
 0x3fd   :  { %v2648_v56 = vpop.xlane.xlu1 %2647 }
 0x3fe   :  { %4253 = vpow2.f32 %v2841_v0  ;;  %v2773_v10 = vsub.f32 %v5269_v37, %v2648_v56  ;;  %v2652_v30 = vpop.xlane.xlu0 %2651 }
 0x3ff   :  { %4255 = vpow2.f32 %v2835_v21  ;;  %v2775_v60 = vsub.f32 %v5272_v39, %v2652_v30 }
 0x400   :  { %v2839_v4 = vmul.f32 1.442695, %v2773_v10 }
 0x401   :  { %v2654_v31 = vpop.xlane.xlu1 %2653  ;;  %v2843_v25 = vmul.f32 1.442695, %v2775_v60 }
 0x402   :  { %4257 = vpow2.f32 %v2839_v4  ;;  %v2776_v44 = vsub.f32 %v5277_v41, %v2654_v31  ;;  %v2656_v36 = vpop.xlane.xlu0 %2655 }
 0x403   :  { %v2777_v34 = vsub.f32 %v5280_v43, %v2656_v36 }
 0x404   :  { %v5519_v33 = vpop.eup %4251  ;;  %v2845_v8 = vmul.f32 1.442695, %v2776_v44 }
 0x405   :  { %2965 = vadd.xlane.f32.xlu1 %v5519_v33  ;;  %v2658_v0 = vpop.xlane.xlu1 %2657  ;;  %v2847_v39 = vmul.f32 1.442695, %v2777_v34 }
 0x406   :  { %4259 = vpow2.f32 %v2845_v8  ;;  %v2778_v37 = vsub.f32 %v5285_v45, %v2658_v0  ;;  %v2660_v56 = vpop.xlane.xlu0 %2659 }
 0x407   :  { %4261 = vpow2.f32 %v2843_v25  ;;  %v2779_v17 = vsub.f32 %v5288_v47, %v2660_v56 }
 0x408   :  { %v5524_v4 = vpop.eup %4253  ;;  %v2849_v41 = vmul.f32 1.442695, %v2778_v37 }
 0x409   :  { %v5526_v21 = vpop.eup %4255  ;;  %2969 = vadd.xlane.f32.xlu1 %v5524_v4  ;;  %v2662_v43 = vpop.xlane.xlu1 %2661  ;;  %v2851_v45 = vmul.f32 1.442695, %v2779_v17 }
 0x40a   :  { %4263 = vpow2.f32 %v2849_v41  ;;  %v2780_v60 = vsub.f32 %v5293_v49, %v2662_v43  ;;  %2963 = vadd.xlane.f32.xlu0 %v5526_v21  ;;  %v2664_v13 = vpop.xlane.xlu0 %2663 }
 0x40b   :  { %4265 = vpow2.f32 %v2847_v39  ;;  %v2781_v52 = vsub.f32 %v5296_v51, %v2664_v13 }
 0x40c   :  { %v5532_v10 = vpop.eup %4257  ;;  %v2853_v47 = vmul.f32 1.442695, %v2780_v60 }
 0x40d   :  { %v2666_v30 = vpop.xlane.xlu1 %2665  ;;  %v2855_v36 = vmul.f32 1.442695, %v2781_v52 }
 0x40e   :  { %4267 = vpow2.f32 %v2853_v47  ;;  %v2782_v31 = vsub.f32 %v5301_v53, %v2666_v30  ;;  %2967 = vadd.xlane.f32.xlu0 %v5532_v10  ;;  %v2668_v44 = vpop.xlane.xlu0 %2667 }
 0x40f   :  { %4269 = vpow2.f32 %v2851_v45  ;;  %v2783_v49 = vsub.f32 %v5304_v55, %v2668_v44 }
 0x410   :  { %v5537_v25 = vpop.eup %4259  ;;  %v2857_v34 = vmul.f32 1.442695, %v2782_v31 }
 0x411   :  { %v5539_v8 = vpop.eup %4261  ;;  %2973 = vadd.xlane.f32.xlu1 %v5537_v25  ;;  %v2670_v51 = vpop.xlane.xlu1 %2669  ;;  %v2859_v37 = vmul.f32 1.442695, %v2783_v49 }
 0x412   :  { %4271 = vpow2.f32 %v2857_v34  ;;  %v2784_v0 = vsub.f32 %v5309_v57, %v2670_v51  ;;  %2971 = vadd.xlane.f32.xlu0 %v5539_v8  ;;  %v2672_v53 = vpop.xlane.xlu0 %2671 }
 0x413   :  { %4273 = vpow2.f32 %v2855_v36  ;;  %v2785_v56 = vsub.f32 %v5312_v59, %v2672_v53 }
 0x414   :  { %v5545_v39 = vpop.eup %4263  ;;  %v2861_v55 = vmul.f32 1.442695, %v2784_v0 }
 0x415   :  { %v5547_v17 = vpop.eup %4265  ;;  %2977 = vadd.xlane.f32.xlu1 %v5545_v39  ;;  %v2674_v41 = vpop.xlane.xlu1 %2673  ;;  %v2863_v60 = vmul.f32 1.442695, %v2785_v56 }
 0x416   :  { %4275 = vpow2.f32 %v2861_v55  ;;  %v2786_v43 = vsub.f32 %v5317_v61, %v2674_v41  ;;  %2975 = vadd.xlane.f32.xlu0 %v5547_v17  ;;  %v2676_v57 = vpop.xlane.xlu0 %2675 }
 0x417   :  { %4277 = vpow2.f32 %v2859_v37  ;;  %v2787_v13 = vsub.f32 %v5320_v63, %v2676_v57 }
 0x418   :  { %v5553_v45 = vpop.eup %4267  ;;  %v2865_v59 = vmul.f32 1.442695, %v2786_v43 }
 0x419   :  { %v5555_v52 = vpop.eup %4269  ;;  %2981 = vadd.xlane.f32.xlu1 %v5553_v45  ;;  %v2678_v47 = vpop.xlane.xlu1 %2677  ;;  %v2867_v31 = vmul.f32 1.442695, %v2787_v13 }
 0x41a   :  { %4279 = vpow2.f32 %v2865_v59  ;;  %v2788_v30 = vsub.f32 %v5325_v1, %v2678_v47  ;;  %2979 = vadd.xlane.f32.xlu0 %v5555_v52  ;;  %v2680_v61 = vpop.xlane.xlu0 %2679 }
 0x41b   :  { %4281 = vpow2.f32 %v2863_v60  ;;  %v2789_v44 = vsub.f32 %v5328_v3, %v2680_v61 }
 0x41c   :  { %v5561_v36 = vpop.eup %4271  ;;  %v2869_v63 = vmul.f32 1.442695, %v2788_v30 }
 0x41d   :  { %v5563_v49 = vpop.eup %4273  ;;  %2985 = vadd.xlane.f32.xlu1 %v5561_v36  ;;  %v2682_v34 = vpop.xlane.xlu1 %2681  ;;  %v2871_v0 = vmul.f32 1.442695, %v2789_v44 }
 0x41e   :  { %4283 = vpow2.f32 %v2869_v63  ;;  %v2790_v51 = vsub.f32 %v5333_v5, %v2682_v34  ;;  %2983 = vadd.xlane.f32.xlu0 %v5563_v49  ;;  %v2684_v1 = vpop.xlane.xlu0 %2683 }
 0x41f   :  { %4285 = vpow2.f32 %v2867_v31  ;;  %v2791_v53 = vsub.f32 %v5336_v7, %v2684_v1 }
 0x420   :  { %v5569_v37 = vpop.eup %4275  ;;  %v2873_v3 = vmul.f32 1.442695, %v2790_v51 }
 0x421   :  { %v5571_v56 = vpop.eup %4277  ;;  %2989 = vadd.xlane.f32.xlu1 %v5569_v37  ;;  %v2686_v55 = vpop.xlane.xlu1 %2685  ;;  %v2875_v43 = vmul.f32 1.442695, %v2791_v53 }
 0x422   :  { %4287 = vpow2.f32 %v2873_v3  ;;  %v2792_v41 = vsub.f32 %v5341_v9, %v2686_v55  ;;  %2987 = vadd.xlane.f32.xlu0 %v5571_v56  ;;  %v2688_v5 = vpop.xlane.xlu0 %2687 }
 0x423   :  { %4289 = vpow2.f32 %v2871_v0  ;;  %v2793_v57 = vsub.f32 %v5344_v12, %v2688_v5 }
 0x424   :  { %v5577_v60 = vpop.eup %4279  ;;  %v2877_v7 = vmul.f32 1.442695, %v2792_v41 }
 0x425   :  { %v5579_v13 = vpop.eup %4281  ;;  %2993 = vadd.xlane.f32.xlu1 %v5577_v60  ;;  %v2690_v59 = vpop.xlane.xlu1 %2689  ;;  %v2879_v30 = vmul.f32 1.442695, %v2793_v57 }
 0x426   :  { %4291 = vpow2.f32 %v2877_v7  ;;  %v2794_v47 = vsub.f32 %v5349_v14, %v2690_v59  ;;  %2991 = vadd.xlane.f32.xlu0 %v5579_v13  ;;  %v2692_v9 = vpop.xlane.xlu0 %2691 }
 0x427   :  { %4293 = vpow2.f32 %v2875_v43  ;;  %v2795_v61 = vsub.f32 %v5352_v16, %v2692_v9 }
 0x428   :  { %v5585_v31 = vpop.eup %4283  ;;  %v2881_v12 = vmul.f32 1.442695, %v2794_v47 }
 0x429   :  { %v5587_v44 = vpop.eup %4285  ;;  %2997 = vadd.xlane.f32.xlu1 %v5585_v31  ;;  %v2694_v63 = vpop.xlane.xlu1 %2693  ;;  %v2883_v51 = vmul.f32 1.442695, %v2795_v61 }
 0x42a   :  { %4295 = vpow2.f32 %v2881_v12  ;;  %v2796_v34 = vsub.f32 %v5357_v18, %v2694_v63  ;;  %2995 = vadd.xlane.f32.xlu0 %v5587_v44  ;;  %v2696_v14 = vpop.xlane.xlu0 %2695 }
 0x42b   :  { %4297 = vpow2.f32 %v2879_v30  ;;  %v2797_v1 = vsub.f32 %v5360_v20, %v2696_v14 }
 0x42c   :  { %v5593_v0 = vpop.eup %4287  ;;  %v2885_v16 = vmul.f32 1.442695, %v2796_v34 }
 0x42d   :  { %v5595_v53 = vpop.eup %4289  ;;  %3001 = vadd.xlane.f32.xlu1 %v5593_v0  ;;  %v2698_v3 = vpop.xlane.xlu1 %2697  ;;  %v2887_v41 = vmul.f32 1.442695, %v2797_v1 }
 0x42e   :  { %4299 = vpow2.f32 %v2885_v16  ;;  %v2798_v55 = vsub.f32 %v5365_v22, %v2698_v3  ;;  %2999 = vadd.xlane.f32.xlu0 %v5595_v53  ;;  %v2700_v18 = vpop.xlane.xlu0 %2699 }
 0x42f   :  { %4301 = vpow2.f32 %v2883_v51  ;;  %v2799_v5 = vsub.f32 %v5368_v24, %v2700_v18 }
 0x430   :  { %v5601_v43 = vpop.eup %4291  ;;  %v2889_v20 = vmul.f32 1.442695, %v2798_v55 }
 0x431   :  { %v5603_v57 = vpop.eup %4293  ;;  %3005 = vadd.xlane.f32.xlu1 %v5601_v43  ;;  %v2702_v7 = vpop.xlane.xlu1 %2701  ;;  %v2891_v47 = vmul.f32 1.442695, %v2799_v5 }
 0x432   :  { %4303 = vpow2.f32 %v2889_v20  ;;  %v2800_v59 = vsub.f32 %v5373_v27, %v2702_v7  ;;  %3003 = vadd.xlane.f32.xlu0 %v5603_v57  ;;  %v2704_v22 = vpop.xlane.xlu0 %2703 }
 0x433   :  { %4305 = vpow2.f32 %v2887_v41  ;;  %v2801_v9 = vsub.f32 %v5376_v29, %v2704_v22 }
 0x434   :  { %v5609_v30 = vpop.eup %4295  ;;  %v2893_v24 = vmul.f32 1.442695, %v2800_v59 }
 0x435   :  { %v5611_v61 = vpop.eup %4297  ;;  %3009 = vadd.xlane.f32.xlu1 %v5609_v30  ;;  %v2706_v12 = vpop.xlane.xlu1 %2705  ;;  %v2895_v34 = vmul.f32 1.442695, %v2801_v9 }
 0x436   :  { %4307 = vpow2.f32 %v2893_v24  ;;  %v2802_v63 = vsub.f32 %v5381_v26, %v2706_v12  ;;  %3007 = vadd.xlane.f32.xlu0 %v5611_v61  ;;  %v2708_v27 = vpop.xlane.xlu0 %2707 }
 0x437   :  { %4309 = vpow2.f32 %v2891_v47  ;;  %v2803_v14 = vsub.f32 %v5384_v35, %v2708_v27 }
 0x438   :  { %v5617_v51 = vpop.eup %4299  ;;  %v2897_v29 = vmul.f32 1.442695, %v2802_v63 }
 0x439   :  { %v5619_v1 = vpop.eup %4301  ;;  %3013 = vadd.xlane.f32.xlu1 %v5617_v51  ;;  %v2710_v16 = vpop.xlane.xlu1 %2709  ;;  %v2899_v55 = vmul.f32 1.442695, %v2803_v14 }
 0x43a   :  { %4311 = vpow2.f32 %v2897_v29  ;;  %v2804_v3 = vsub.f32 %v5389_v38, %v2710_v16  ;;  %3011 = vadd.xlane.f32.xlu0 %v5619_v1  ;;  %v2712_v26 = vpop.xlane.xlu0 %2711 }
 0x43b   :  { %4313 = vpow2.f32 %v2895_v34  ;;  %v2805_v18 = vsub.f32 %v5392_v42, %v2712_v26 }
 0x43c   :  { %v5625_v41 = vpop.eup %4303  ;;  %v2901_v35 = vmul.f32 1.442695, %v2804_v3 }
 0x43d   :  { %v5627_v5 = vpop.eup %4305  ;;  %3017 = vadd.xlane.f32.xlu1 %v5625_v41  ;;  %v2714_v20 = vpop.xlane.xlu1 %2713  ;;  %v2903_v59 = vmul.f32 1.442695, %v2805_v18 }
 0x43e   :  { %4315 = vpow2.f32 %v2901_v35  ;;  %v2806_v7 = vsub.f32 %v5397_v46, %v2714_v20  ;;  %3015 = vadd.xlane.f32.xlu0 %v5627_v5  ;;  %v2716_v38 = vpop.xlane.xlu0 %2715 }
 0x43f   :  { %4317 = vpow2.f32 %v2899_v55  ;;  %v2807_v22 = vsub.f32 %v5400_v50, %v2716_v38 }
 0x440   :  { %v5633_v47 = vpop.eup %4307  ;;  %v2905_v42 = vmul.f32 1.442695, %v2806_v7 }
 0x441   :  { %v5635_v9 = vpop.eup %4309  ;;  %3021 = vadd.xlane.f32.xlu1 %v5633_v47  ;;  %v2718_v24 = vpop.xlane.xlu1 %2717  ;;  %v2907_v63 = vmul.f32 1.442695, %v2807_v22 }
 0x442   :  { %4319 = vpow2.f32 %v2905_v42  ;;  %v2808_v12 = vsub.f32 %v5405_v54, %v2718_v24  ;;  %3019 = vadd.xlane.f32.xlu0 %v5635_v9  ;;  %v2720_v46 = vpop.xlane.xlu0 %2719 }
 0x443   :  { %4321 = vpow2.f32 %v2903_v59  ;;  %v2809_v27 = vsub.f32 %v5408_v58, %v2720_v46 }
 0x444   :  { %v5641_v34 = vpop.eup %4311  ;;  %v2909_v50 = vmul.f32 1.442695, %v2808_v12 }
 0x445   :  { %v5643_v14 = vpop.eup %4313  ;;  %3025 = vadd.xlane.f32.xlu1 %v5641_v34  ;;  %v2722_v29 = vpop.xlane.xlu1 %2721  ;;  %v2911_v3 = vmul.f32 1.442695, %v2809_v27 }
 0x446   :  { %4323 = vpow2.f32 %v2909_v50  ;;  %v2810_v16 = vsub.f32 %v5413_v62, %v2722_v29  ;;  %3023 = vadd.xlane.f32.xlu0 %v5643_v14  ;;  %v2724_v54 = vpop.xlane.xlu0 %2723 }
 0x447   :  { %4325 = vpow2.f32 %v2907_v63  ;;  %v2811_v26 = vsub.f32 %v5416_v2, %v2724_v54 }
 0x448   :  { %v5649_v55 = vpop.eup %4315  ;;  %v2913_v58 = vmul.f32 1.442695, %v2810_v16 }
 0x449   :  { %v5651_v18 = vpop.eup %4317  ;;  %3029 = vadd.xlane.f32.xlu1 %v5649_v55  ;;  %v2726_v35 = vpop.xlane.xlu1 %2725  ;;  %v2915_v7 = vmul.f32 1.442695, %v2811_v26 }
 0x44a   :  { %4327 = vpow2.f32 %v2913_v58  ;;  %v2812_v20 = vsub.f32 %v5421_v6, %v2726_v35  ;;  %3027 = vadd.xlane.f32.xlu0 %v5651_v18  ;;  %v2728_v62 = vpop.xlane.xlu0 %2727 }
 0x44b   :  { %4329 = vpow2.f32 %v2911_v3  ;;  %v2813_v38 = vsub.f32 %v5424_v11, %v2728_v62 }
 0x44c   :  { %v5657_v59 = vpop.eup %4319  ;;  %v2917_v2 = vmul.f32 1.442695, %v2812_v20 }
 0x44d   :  { %v5659_v22 = vpop.eup %4321  ;;  %3033 = vadd.xlane.f32.xlu1 %v5657_v59  ;;  %v2730_v42 = vpop.xlane.xlu1 %2729  ;;  %v2919_v12 = vmul.f32 1.442695, %v2813_v38 }
 0x44e   :  { %4331 = vpow2.f32 %v2917_v2  ;;  %v2814_v24 = vsub.f32 %v5429_v15, %v2730_v42  ;;  %3031 = vadd.xlane.f32.xlu0 %v5659_v22  ;;  %v2732_v6 = vpop.xlane.xlu0 %2731 }
 0x44f   :  { %4333 = vpow2.f32 %v2915_v7  ;;  %v2815_v46 = vsub.f32 %v5432_v19, %v2732_v6  ;;  %v6072_v6 = vld [vmem:[#allocation2_spill] sm:$0xff] }
 0x450   :  { %v5665_v63 = vpop.eup %4323  ;;  %v2921_v11 = vmul.f32 1.442695, %v2814_v24 }
 0x451   :  { %v5667_v27 = vpop.eup %4325  ;;  %3037 = vadd.xlane.f32.xlu1 %v5665_v63  ;;  %v2734_v50 = vpop.xlane.xlu1 %2733  ;;  %v2923_v16 = vmul.f32 1.442695, %v2815_v46 }
 0x452   :  { %4335 = vpow2.f32 %v2921_v11  ;;  %v2816_v29 = vsub.f32 %v5437_v23, %v2734_v50  ;;  %3035 = vadd.xlane.f32.xlu0 %v5667_v27  ;;  %v2736_v15 = vpop.xlane.xlu0 %2735 }
 0x453   :  { %4337 = vpow2.f32 %v2919_v12  ;;  %v2817_v54 = vsub.f32 %v5440_v28, %v2736_v15 }
 0x454   :  { %v5673_v3 = vpop.eup %4327  ;;  %v2925_v19 = vmul.f32 1.442695, %v2816_v29  ;;  %v6073_v29 = vld [vmem:[#allocation3_spill] sm:$0xff] }
 0x455   :  { %v5675_v26 = vpop.eup %4329  ;;  %3041 = vadd.xlane.f32.xlu1 %v5673_v3  ;;  %v2738_v58 = vpop.xlane.xlu1 %2737  ;;  %v2927_v20 = vmul.f32 1.442695, %v2817_v54  ;;  %v6074_v54 = vld [vmem:[#allocation4_spill] sm:$0xff] }
 0x456   :  { %4339 = vpow2.f32 %v2925_v19  ;;  %v2818_v35 = vsub.f32 %v5445_v32, %v2738_v58  ;;  %3039 = vadd.xlane.f32.xlu0 %v5675_v26  ;;  %v2740_v23 = vpop.xlane.xlu0 %2739 }
 0x457   :  { %4341 = vpow2.f32 %v2923_v16  ;;  %v2819_v62 = vsub.f32 %v5448_v40, %v2740_v23 }
 0x458   :  { %v5681_v7 = vpop.eup %4331  ;;  %v2929_v28 = vmul.f32 1.442695, %v2818_v35 }
 0x459   :  { %v5683_v38 = vpop.eup %4333  ;;  %3045 = vadd.xlane.f32.xlu1 %v5681_v7  ;;  %v2742_v2 = vpop.xlane.xlu1 %2741  ;;  %v2931_v24 = vmul.f32 1.442695, %v2819_v62  ;;  %v6075_v62 = vld [vmem:[#allocation5_spill] sm:$0xff] }
 0x45a   :  { %4343 = vpow2.f32 %v2929_v28  ;;  %v2820_v42 = vsub.f32 %v5453_v48, %v2742_v2  ;;  %3043 = vadd.xlane.f32.xlu0 %v5683_v38  ;;  %v2744_v32 = vpop.xlane.xlu0 %2743 }
 0x45b   :  { %4345 = vpow2.f32 %v2927_v20  ;;  %v2821_v12 = vsub.f32 %v6072_v6, %v2744_v32  ;;  %v6076_v32 = vld [vmem:[#allocation6_spill] sm:$0xff] }
 0x45c   :  { %v5689_v46 = vpop.eup %4335  ;;  %v2933_v40 = vmul.f32 1.442695, %v2820_v42 }
 0x45d   :  { %v5691_v11 = vpop.eup %4337  ;;  %3049 = vadd.xlane.f32.xlu1 %v5689_v46  ;;  %v2746_v50 = vpop.xlane.xlu1 %2745  ;;  %v2935_v16 = vmul.f32 1.442695, %v2821_v12 }
 0x45e   :  { %4347 = vpow2.f32 %v2933_v40  ;;  %v2822_v15 = vsub.f32 %v6073_v29, %v2746_v50  ;;  %3047 = vadd.xlane.f32.xlu0 %v5691_v11  ;;  %v2748_v48 = vpop.xlane.xlu0 %2747  ;;  %v6077_v29 = vld [vmem:[#allocation7_spill] sm:$0xff] }
 0x45f   :  { %4349 = vpow2.f32 %v2931_v24  ;;  %v2823_v19 = vsub.f32 %v6074_v54, %v2748_v48 }
 0x460   :  { %v5697_v58 = vpop.eup %4339  ;;  %v2937_v35 = vmul.f32 1.442695, %v2822_v15 }
 0x461   :  { %v5699_v23 = vpop.eup %4341  ;;  %3053 = vadd.xlane.f32.xlu1 %v5697_v58  ;;  %v2750_v20 = vpop.xlane.xlu1 %2749  ;;  %v2939_v42 = vmul.f32 1.442695, %v2823_v19 }
 0x462   :  { %4351 = vpow2.f32 %v2937_v35  ;;  %v2824_v28 = vsub.f32 %v6075_v62, %v2750_v20  ;;  %3051 = vadd.xlane.f32.xlu0 %v5699_v23  ;;  %v2752_v2 = vpop.xlane.xlu0 %2751 }
 0x463   :  { %4353 = vpow2.f32 %v2935_v16  ;;  %v2825_v24 = vsub.f32 %v6076_v32, %v2752_v2  ;;  %v6078_v16 = vld [vmem:[#allocation8_spill] sm:$0xff]  ;;  %v6081_v2 = vld [vmem:[#allocation9_spill] sm:$0xff] }
 0x464   :  { %v5705_v6 = vpop.eup %4343  ;;  %v2941_v12 = vmul.f32 1.442695, %v2824_v28 }
 0x465   :  { %v5707_v40 = vpop.eup %4345  ;;  %3057 = vadd.xlane.f32.xlu1 %v5705_v6  ;;  %v2754_v50 = vpop.xlane.xlu1 %2753  ;;  %v2943_v54 = vmul.f32 1.442695, %v2825_v24 }
 0x466   :  { %4355 = vpow2.f32 %v2941_v12  ;;  %v2826_v15 = vsub.f32 %v6077_v29, %v2754_v50  ;;  %3055 = vadd.xlane.f32.xlu0 %v5707_v40  ;;  %v2756_v48 = vpop.xlane.xlu0 %2755 }
 0x467   :  { %4357 = vpow2.f32 %v2939_v42  ;;  %v2827_v19 = vsub.f32 %v6078_v16, %v2756_v48  ;;  %v6082_v42 = vld [vmem:[#allocation10_spill] sm:$0xff] }
 0x468   :  { %v5713_v35 = vpop.eup %4347  ;;  %v2945_v20 = vmul.f32 1.442695, %v2826_v15 }
 0x469   :  { %6079 = vst [vmem:[#allocation2_spill] sm:$0xff] %v5713_v35  ;;  %v5715_v62 = vpop.eup %4349  ;;  %3061 = vadd.xlane.f32.xlu1 %v5713_v35  ;;  %v2758_v28 = vpop.xlane.xlu1 %2757  ;;  %v2947_v50 = vmul.f32 1.442695, %v2827_v19  ;;  %v6085_v35 = vld [vmem:[#allocation11_spill] sm:$0xff] }
 0x46a   :  { %6080 = vst [vmem:[#allocation3_spill] sm:$0xff] %v5715_v62  ;;  %4359 = vpow2.f32 %v2945_v20  ;;  %v2828_v32 = vsub.f32 %v6081_v2, %v2758_v28  ;;  %3059 = vadd.xlane.f32.xlu0 %v5715_v62  ;;  %v2760_v12 = vpop.xlane.xlu0 %2759 }
 0x46b   :  { %4361 = vpow2.f32 %v2943_v54  ;;  %v2829_v24 = vsub.f32 %v6082_v42, %v2760_v12  ;;  %v6086_v54 = vld [vmem:[#allocation12_spill] sm:$0xff] }
 0x46c   :  { %v5721_v29 = vpop.eup %4351  ;;  %v2949_v48 = vmul.f32 1.442695, %v2828_v32 }
 0x46d   :  { %6083 = vst [vmem:[#allocation4_spill] sm:$0xff] %v5721_v29  ;;  %v5723_v16 = vpop.eup %4353  ;;  %3065 = vadd.xlane.f32.xlu1 %v5721_v29  ;;  %v2762_v15 = vpop.xlane.xlu1 %2761  ;;  %v2951_v2 = vmul.f32 1.442695, %v2829_v24  ;;  %v6088_v29 = vld [vmem:[#allocation13_spill] sm:$0xff] }
 0x46e   :  { %6084 = vst [vmem:[#allocation5_spill] sm:$0xff] %v5723_v16  ;;  %4363 = vpow2.f32 %v2949_v48  ;;  %v2830_v20 = vsub.f32 %v6085_v35, %v2762_v15  ;;  %3063 = vadd.xlane.f32.xlu0 %v5723_v16  ;;  %v2764_v28 = vpop.xlane.xlu0 %2763 }
 0x46f   :  { %4365 = vpow2.f32 %v2947_v50  ;;  %v2831_v19 = vsub.f32 %v6086_v54, %v2764_v28  ;;  %v6089_v50 = vld [vmem:[#allocation14_spill] sm:$0xff] }
 0x470   :  { %v5729_v62 = vpop.eup %4355  ;;  %v2953_v12 = vmul.f32 1.442695, %v2830_v20 }
 0x471   :  { %6087 = vst [vmem:[#allocation6_spill] sm:$0xff] %v5729_v62  ;;  %v5731_v42 = vpop.eup %4357  ;;  %3069 = vadd.xlane.f32.xlu1 %v5729_v62  ;;  %v2766_v32 = vpop.xlane.xlu1 %2765  ;;  %v2955_v15 = vmul.f32 1.442695, %v2831_v19  ;;  %v6090_v62 = vld [vmem:[#allocation15_spill] sm:$0xff] }
 0x472   :  { %4367 = vpow2.f32 %v2953_v12  ;;  %v2832_v48 = vsub.f32 %v6088_v29, %v2766_v32  ;;  %3067 = vadd.xlane.f32.xlu0 %v5731_v42  ;;  %v2768_v35 = vpop.xlane.xlu0 %2767 }
 0x473   :  { %4369 = vpow2.f32 %v2951_v2  ;;  %v2833_v24 = vsub.f32 %v6089_v50, %v2768_v35 }
 0x474   :  { %v5737_v16 = vpop.eup %4359  ;;  %v2957_v28 = vmul.f32 1.442695, %v2832_v48 }
 0x475   :  { %v5739_v54 = vpop.eup %4361  ;;  %3073 = vadd.xlane.f32.xlu1 %v5737_v16  ;;  %v2770_v20 = vpop.xlane.xlu1 %2769  ;;  %v2959_v29 = vmul.f32 1.442695, %v2833_v24 }
 0x476   :  { %4371 = vpow2.f32 %v2957_v28  ;;  %v2834_v12 = vsub.f32 %v6090_v62, %v2770_v20  ;;  %3071 = vadd.xlane.f32.xlu0 %v5739_v54 }
 0x477   :  { %4373 = vpow2.f32 %v2955_v15 }
 0x478   :  { %v5744_v32 = vpop.eup %4363  ;;  %v2961_v2 = vmul.f32 1.442695, %v2834_v12 }
 0x479   :  { %v5746_v19 = vpop.eup %4365  ;;  %3077 = vadd.xlane.f32.xlu1 %v5744_v32 }
 0x47a   :  { %4375 = vpow2.f32 %v2961_v2  ;;  %3075 = vadd.xlane.f32.xlu0 %v5746_v19 }
 0x47b   :  { %4377 = vpow2.f32 %v2959_v29 }
 0x47c   :  { %v5750_v48 = vpop.eup %4367 }
 0x47d   :  { %v5752_v35 = vpop.eup %4369  ;;  %3081 = vadd.xlane.f32.xlu1 %v5750_v48 }
 0x47e   :  { %6091 = vst [vmem:[#allocation7_spill] sm:$0xff] %v5752_v35  ;;  %3079 = vadd.xlane.f32.xlu0 %v5752_v35 }
 0x480   :  { %v5756_v62 = vpop.eup %4371 }
 0x481   :  { %6092 = vst [vmem:[#allocation8_spill] sm:$0xff] %v5756_v62  ;;  %v5758_v15 = vpop.eup %4373  ;;  %3085 = vadd.xlane.f32.xlu1 %v5756_v62 }
 0x482   :  { %6093 = vst [vmem:[#allocation9_spill] sm:$0xff] %v5758_v15  ;;  %3083 = vadd.xlane.f32.xlu0 %v5758_v15 }
 0x484   :  { %v5762_v50 = vpop.eup %4375 }
 0x485   :  { %6094 = vst [vmem:[#allocation10_spill] sm:$0xff] %v5762_v50  ;;  %v5764_v24 = vpop.eup %4377  ;;  %3089 = vadd.xlane.f32.xlu1 %v5762_v50 }
 0x486   :  { %6095 = vst [vmem:[#allocation11_spill] sm:$0xff] %v5764_v24  ;;  %3087 = vadd.xlane.f32.xlu0 %v5764_v24 }
 0x492   :  { %v2966_v28 = vpop.xlane.xlu1 %2965 }
 0x493   :  { %4379 = vrcp.f32 %v2966_v28 }
 0x496   :  { %v2970_v20 = vpop.xlane.xlu1 %2969 }
 0x497   :  { %4381 = vrcp.f32 %v2970_v20  ;;  %v2964_v12 = vpop.xlane.xlu0 %2963 }
 0x498   :  { %4383 = vrcp.f32 %v2964_v12 }
 0x49b   :  { %v2968_v29 = vpop.xlane.xlu0 %2967 }
 0x49c   :  { %4385 = vrcp.f32 %v2968_v29 }
 0x49d   :  { %v4380_v2 = vpop.eup %4379 }
 0x49e   :  { %v3094_v62 = vmul.f32 %v4380_v2, %v5519_v33  ;;  %v2974_v15 = vpop.xlane.xlu1 %2973 }
 0x49f   :  { %4387 = vrcp.f32 %v2974_v15  ;;  %v2972_v35 = vpop.xlane.xlu0 %2971 }
 0x4a0   :  { %3220 = vst [vmem:[%s6033_s9 + $0x8] sm:$0xff] %v3094_v62  ;;  %4389 = vrcp.f32 %v2972_v35 }
 0x4a1   :  { %v4382_v24 = vpop.eup %4381 }
 0x4a2   :  { %v4384_v50 = vpop.eup %4383  ;;  %v3098_v28 = vmul.f32 %v4382_v24, %v5524_v4  ;;  %v2978_v20 = vpop.xlane.xlu1 %2977 }
 0x4a3   :  { %v3092_v12 = vmul.f32 %v4384_v50, %v5526_v21  ;;  %4391 = vrcp.f32 %v2978_v20  ;;  %v2976_v29 = vpop.xlane.xlu0 %2975 }
 0x4a4   :  { %3222 = vst [vmem:[%s6033_s9 + $0x18] sm:$0xff] %v3098_v28  ;;  %4393 = vrcp.f32 %v2976_v29 }
 0x4a5   :  { %3219 = vst [vmem:[%s6033_s9] sm:$0xff] %v3092_v12 }
 0x4a6   :  { %v4386_v33 = vpop.eup %4385  ;;  %v2982_v35 = vpop.xlane.xlu1 %2981 }
 0x4a7   :  { %v3096_v62 = vmul.f32 %v4386_v33, %v5532_v10  ;;  %4395 = vrcp.f32 %v2982_v35  ;;  %v2980_v4 = vpop.xlane.xlu0 %2979 }
 0x4a8   :  { %4397 = vrcp.f32 %v2980_v4 }
 0x4a9   :  { %v4388_v15 = vpop.eup %4387  ;;  %3221 = vst [vmem:[%s6033_s9 + $0x10] sm:$0xff] %v3096_v62 }
 0x4aa   :  { %v4390_v21 = vpop.eup %4389  ;;  %v3102_v50 = vmul.f32 %v4388_v15, %v5537_v25  ;;  %v2986_v24 = vpop.xlane.xlu1 %2985 }
 0x4ab   :  { %v3100_v2 = vmul.f32 %v4390_v21, %v5539_v8  ;;  %4399 = vrcp.f32 %v2986_v24  ;;  %v2984_v28 = vpop.xlane.xlu0 %2983 }
 0x4ac   :  { %3224 = vst [vmem:[%s6033_s9 + $0x28] sm:$0xff] %v3102_v50  ;;  %4401 = vrcp.f32 %v2984_v28 }
 0x4ad   :  { %v4392_v10 = vpop.eup %4391  ;;  %3223 = vst [vmem:[%s6033_s9 + $0x20] sm:$0xff] %v3100_v2 }
 0x4ae   :  { %v4394_v20 = vpop.eup %4393  ;;  %v3106_v12 = vmul.f32 %v4392_v10, %v5545_v39  ;;  %v2990_v29 = vpop.xlane.xlu1 %2989 }
 0x4af   :  { %v3104_v25 = vmul.f32 %v4394_v20, %v5547_v17  ;;  %4403 = vrcp.f32 %v2990_v29  ;;  %v2988_v8 = vpop.xlane.xlu0 %2987 }
 0x4b0   :  { %3226 = vst [vmem:[%s6033_s9 + $0x38] sm:$0xff] %v3106_v12  ;;  %4405 = vrcp.f32 %v2988_v8 }
 0x4b1   :  { %v4396_v33 = vpop.eup %4395  ;;  %3225 = vst [vmem:[%s6033_s9 + $0x30] sm:$0xff] %v3104_v25 }
 0x4b2   :  { %v4398_v35 = vpop.eup %4397  ;;  %v3110_v62 = vmul.f32 %v4396_v33, %v5553_v45  ;;  %v2994_v4 = vpop.xlane.xlu1 %2993 }
 0x4b3   :  { %v3108_v39 = vmul.f32 %v4398_v35, %v5555_v52  ;;  %4407 = vrcp.f32 %v2994_v4  ;;  %v2992_v17 = vpop.xlane.xlu0 %2991 }
 0x4b4   :  { %3228 = vst [vmem:[%s6033_s9 + $0x48] sm:$0xff] %v3110_v62  ;;  %4409 = vrcp.f32 %v2992_v17 }
 0x4b5   :  { %v4400_v15 = vpop.eup %4399  ;;  %3227 = vst [vmem:[%s6033_s9 + $0x40] sm:$0xff] %v3108_v39 }
 0x4b6   :  { %v4402_v21 = vpop.eup %4401  ;;  %v3114_v50 = vmul.f32 %v4400_v15, %v5561_v36  ;;  %v2998_v24 = vpop.xlane.xlu1 %2997 }
 0x4b7   :  { %v3112_v45 = vmul.f32 %v4402_v21, %v5563_v49  ;;  %4411 = vrcp.f32 %v2998_v24  ;;  %v2996_v52 = vpop.xlane.xlu0 %2995 }
 0x4b8   :  { %3230 = vst [vmem:[%s6033_s9 + $0x58] sm:$0xff] %v3114_v50  ;;  %4413 = vrcp.f32 %v2996_v52 }
 0x4b9   :  { %v4404_v2 = vpop.eup %4403  ;;  %3229 = vst [vmem:[%s6033_s9 + $0x50] sm:$0xff] %v3112_v45 }
 0x4ba   :  { %v4406_v28 = vpop.eup %4405  ;;  %v3118_v10 = vmul.f32 %v4404_v2, %v5569_v37  ;;  %v3002_v20 = vpop.xlane.xlu1 %3001 }
 0x4bb   :  { %v3116_v36 = vmul.f32 %v4406_v28, %v5571_v56  ;;  %4415 = vrcp.f32 %v3002_v20  ;;  %v3000_v49 = vpop.xlane.xlu0 %2999 }
 0x4bc   :  { %3232 = vst [vmem:[%s6033_s9 + $0x68] sm:$0xff] %v3118_v10  ;;  %4417 = vrcp.f32 %v3000_v49 }
 0x4bd   :  { %v4408_v12 = vpop.eup %4407  ;;  %3231 = vst [vmem:[%s6033_s9 + $0x60] sm:$0xff] %v3116_v36 }
 0x4be   :  { %v4410_v29 = vpop.eup %4409  ;;  %v3122_v25 = vmul.f32 %v4408_v12, %v5577_v60  ;;  %v3006_v8 = vpop.xlane.xlu1 %3005 }
 0x4bf   :  { %v3120_v37 = vmul.f32 %v4410_v29, %v5579_v13  ;;  %4419 = vrcp.f32 %v3006_v8  ;;  %v3004_v56 = vpop.xlane.xlu0 %3003 }
 0x4c0   :  { %3234 = vst [vmem:[%s6033_s9 + $0x78] sm:$0xff] %v3122_v25  ;;  %4421 = vrcp.f32 %v3004_v56 }
 0x4c1   :  { %v4412_v33 = vpop.eup %4411  ;;  %3233 = vst [vmem:[%s6033_s9 + $0x70] sm:$0xff] %v3120_v37 }
 0x4c2   :  { %v4414_v35 = vpop.eup %4413  ;;  %v3126_v62 = vmul.f32 %v4412_v33, %v5585_v31  ;;  %v3010_v4 = vpop.xlane.xlu1 %3009 }
 0x4c3   :  { %v3124_v60 = vmul.f32 %v4414_v35, %v5587_v44  ;;  %4423 = vrcp.f32 %v3010_v4  ;;  %v3008_v13 = vpop.xlane.xlu0 %3007 }
 0x4c4   :  { %3236 = vst [vmem:[%s6033_s9 + $0x88] sm:$0xff] %v3126_v62  ;;  %4425 = vrcp.f32 %v3008_v13 }
 0x4c5   :  { %v4416_v39 = vpop.eup %4415  ;;  %3235 = vst [vmem:[%s6033_s9 + $0x80] sm:$0xff] %v3124_v60 }
 0x4c6   :  { %v4418_v17 = vpop.eup %4417  ;;  %v3130_v15 = vmul.f32 %v4416_v39, %v5593_v0  ;;  %v3014_v21 = vpop.xlane.xlu1 %3013 }
 0x4c7   :  { %v3128_v31 = vmul.f32 %v4418_v17, %v5595_v53  ;;  %4427 = vrcp.f32 %v3014_v21  ;;  %v3012_v44 = vpop.xlane.xlu0 %3011 }
 0x4c8   :  { %3238 = vst [vmem:[%s6033_s9 + $0x98] sm:$0xff] %v3130_v15  ;;  %4429 = vrcp.f32 %v3012_v44 }
 0x4c9   :  { %v4420_v50 = vpop.eup %4419  ;;  %3237 = vst [vmem:[%s6033_s9 + $0x90] sm:$0xff] %v3128_v31 }
 0x4ca   :  { %v4422_v24 = vpop.eup %4421  ;;  %v3134_v45 = vmul.f32 %v4420_v50, %v5601_v43  ;;  %v3018_v52 = vpop.xlane.xlu1 %3017 }
 0x4cb   :  { %v3132_v0 = vmul.f32 %v4422_v24, %v5603_v57  ;;  %4431 = vrcp.f32 %v3018_v52  ;;  %v3016_v53 = vpop.xlane.xlu0 %3015 }
 0x4cc   :  { %3240 = vst [vmem:[%s6033_s9 + $0xa8] sm:$0xff] %v3134_v45  ;;  %4433 = vrcp.f32 %v3016_v53 }
 0x4cd   :  { %v4424_v2 = vpop.eup %4423  ;;  %3239 = vst [vmem:[%s6033_s9 + $0xa0] sm:$0xff] %v3132_v0 }
 0x4ce   :  { %v4426_v28 = vpop.eup %4425  ;;  %v3138_v10 = vmul.f32 %v4424_v2, %v5609_v30  ;;  %v3022_v20 = vpop.xlane.xlu1 %3021 }
 0x4cf   :  { %v3136_v43 = vmul.f32 %v4426_v28, %v5611_v61  ;;  %4435 = vrcp.f32 %v3022_v20  ;;  %v3020_v57 = vpop.xlane.xlu0 %3019 }
 0x4d0   :  { %3242 = vst [vmem:[%s6033_s9 + $0xb8] sm:$0xff] %v3138_v10  ;;  %4437 = vrcp.f32 %v3020_v57 }
 0x4d1   :  { %v4428_v36 = vpop.eup %4427  ;;  %3241 = vst [vmem:[%s6033_s9 + $0xb0] sm:$0xff] %v3136_v43 }
 0x4d2   :  { %v4430_v49 = vpop.eup %4429  ;;  %v3142_v12 = vmul.f32 %v4428_v36, %v5617_v51  ;;  %v3026_v29 = vpop.xlane.xlu1 %3025 }
 0x4d3   :  { %v3140_v30 = vmul.f32 %v4430_v49, %v5619_v1  ;;  %4439 = vrcp.f32 %v3026_v29  ;;  %v3024_v61 = vpop.xlane.xlu0 %3023 }
 0x4d4   :  { %3244 = vst [vmem:[%s6033_s9 + $0xc8] sm:$0xff] %v3142_v12  ;;  %4441 = vrcp.f32 %v3024_v61 }
 0x4d5   :  { %v4432_v25 = vpop.eup %4431  ;;  %3243 = vst [vmem:[%s6033_s9 + $0xc0] sm:$0xff] %v3140_v30 }
 0x4d6   :  { %v4434_v8 = vpop.eup %4433  ;;  %v3146_v37 = vmul.f32 %v4432_v25, %v5625_v41  ;;  %v3030_v56 = vpop.xlane.xlu1 %3029 }
 0x4d7   :  { %v3144_v51 = vmul.f32 %v4434_v8, %v5627_v5  ;;  %4443 = vrcp.f32 %v3030_v56  ;;  %v3028_v1 = vpop.xlane.xlu0 %3027 }
 0x4d8   :  { %3246 = vst [vmem:[%s6033_s9 + $0xd8] sm:$0xff] %v3146_v37  ;;  %4445 = vrcp.f32 %v3028_v1 }
 0x4d9   :  { %v4436_v33 = vpop.eup %4435  ;;  %3245 = vst [vmem:[%s6033_s9 + $0xd0] sm:$0xff] %v3144_v51 }
 0x4da   :  { %v4438_v35 = vpop.eup %4437  ;;  %v3150_v62 = vmul.f32 %v4436_v33, %v5633_v47  ;;  %v3034_v4 = vpop.xlane.xlu1 %3033 }
 0x4db   :  { %v3148_v41 = vmul.f32 %v4438_v35, %v5635_v9  ;;  %4447 = vrcp.f32 %v3034_v4  ;;  %v3032_v5 = vpop.xlane.xlu0 %3031 }
 0x4dc   :  { %3248 = vst [vmem:[%s6033_s9 + $0xe8] sm:$0xff] %v3150_v62  ;;  %4449 = vrcp.f32 %v3032_v5 }
 0x4dd   :  { %v4440_v60 = vpop.eup %4439  ;;  %3247 = vst [vmem:[%s6033_s9 + $0xe0] sm:$0xff] %v3148_v41 }
 0x4de   :  { %v4442_v13 = vpop.eup %4441  ;;  %v3154_v39 = vmul.f32 %v4440_v60, %v5641_v34  ;;  %v3038_v17 = vpop.xlane.xlu1 %3037  ;;  %v6096_v60 = vld [vmem:[#allocation2_spill] sm:$0xff] }
 0x4df   :  { %v3152_v47 = vmul.f32 %v4442_v13, %v5643_v14  ;;  %4451 = vrcp.f32 %v3038_v17  ;;  %v3036_v9 = vpop.xlane.xlu0 %3035 }
 0x4e0   :  { %3250 = vst [vmem:[%s6033_s9 + $0xf8] sm:$0xff] %v3154_v39  ;;  %4453 = vrcp.f32 %v3036_v9 }
 0x4e1   :  { %v4444_v15 = vpop.eup %4443  ;;  %3249 = vst [vmem:[%s6033_s9 + $0xf0] sm:$0xff] %v3152_v47 }
 0x4e2   :  { %v4446_v21 = vpop.eup %4445  ;;  %v3158_v31 = vmul.f32 %v4444_v15, %v5649_v55  ;;  %v3042_v44 = vpop.xlane.xlu1 %3041  ;;  %v6098_v15 = vld [vmem:[#allocation4_spill] sm:$0xff] }
 0x4e3   :  { %v3156_v34 = vmul.f32 %v4446_v21, %v5651_v18  ;;  %4455 = vrcp.f32 %v3042_v44  ;;  %v3040_v14 = vpop.xlane.xlu0 %3039  ;;  %v6099_v44 = vld [vmem:[#allocation5_spill] sm:$0xff] }
 0x4e4   :  { %3252 = vst [vmem:[%s6033_s9 + $0x108] sm:$0xff] %v3158_v31  ;;  %4457 = vrcp.f32 %v3040_v14 }
 0x4e5   :  { %v4448_v50 = vpop.eup %4447  ;;  %3251 = vst [vmem:[%s6033_s9 + $0x100] sm:$0xff] %v3156_v34 }
 0x4e6   :  { %v4450_v24 = vpop.eup %4449  ;;  %v3162_v45 = vmul.f32 %v4448_v50, %v5657_v59  ;;  %v3046_v52 = vpop.xlane.xlu1 %3045 }
 0x4e7   :  { %v3160_v55 = vmul.f32 %v4450_v24, %v5659_v22  ;;  %4459 = vrcp.f32 %v3046_v52  ;;  %v3044_v18 = vpop.xlane.xlu0 %3043 }
 0x4e8   :  { %3254 = vst [vmem:[%s6033_s9 + $0x118] sm:$0xff] %v3162_v45  ;;  %4461 = vrcp.f32 %v3044_v18  ;;  %v6100_v45 = vld [vmem:[#allocation6_spill] sm:$0xff] }
 0x4e9   :  { %v4452_v0 = vpop.eup %4451  ;;  %3253 = vst [vmem:[%s6033_s9 + $0x110] sm:$0xff] %v3160_v55 }
 0x4ea   :  { %v4454_v53 = vpop.eup %4453  ;;  %v3166_v2 = vmul.f32 %v4452_v0, %v5665_v63  ;;  %v3050_v28 = vpop.xlane.xlu1 %3049 }
 0x4eb   :  { %v3164_v59 = vmul.f32 %v4454_v53, %v5667_v27  ;;  %4463 = vrcp.f32 %v3050_v28  ;;  %v3048_v22 = vpop.xlane.xlu0 %3047 }
 0x4ec   :  { %3256 = vst [vmem:[%s6033_s9 + $0x128] sm:$0xff] %v3166_v2  ;;  %4465 = vrcp.f32 %v3048_v22 }
 0x4ed   :  { %v4456_v10 = vpop.eup %4455  ;;  %3255 = vst [vmem:[%s6033_s9 + $0x120] sm:$0xff] %v3164_v59 }
 0x4ee   :  { %v4458_v20 = vpop.eup %4457  ;;  %v3170_v43 = vmul.f32 %v4456_v10, %v5673_v3  ;;  %v3054_v57 = vpop.xlane.xlu1 %3053 }
 0x4ef   :  { %v3168_v63 = vmul.f32 %v4458_v20, %v5675_v26  ;;  %4467 = vrcp.f32 %v3054_v57  ;;  %v3052_v27 = vpop.xlane.xlu0 %3051 }
 0x4f0   :  { %3258 = vst [vmem:[%s6033_s9 + $0x138] sm:$0xff] %v3170_v43  ;;  %4469 = vrcp.f32 %v3052_v27 }
 0x4f1   :  { %v4460_v36 = vpop.eup %4459  ;;  %3257 = vst [vmem:[%s6033_s9 + $0x130] sm:$0xff] %v3168_v63 }
 0x4f2   :  { %v4462_v49 = vpop.eup %4461  ;;  %v3174_v12 = vmul.f32 %v4460_v36, %v5681_v7  ;;  %v3058_v29 = vpop.xlane.xlu1 %3057 }
 0x4f3   :  { %v3172_v3 = vmul.f32 %v4462_v49, %v5683_v38  ;;  %4471 = vrcp.f32 %v3058_v29  ;;  %v3056_v26 = vpop.xlane.xlu0 %3055  ;;  %v6101_v49 = vld [vmem:[#allocation7_spill] sm:$0xff]  ;;  %v6102_v29 = vld [vmem:[#allocation8_spill] sm:$0xff] }
 0x4f4   :  { %3260 = vst [vmem:[%s6033_s9 + $0x148] sm:$0xff] %v3174_v12  ;;  %4473 = vrcp.f32 %v3056_v26  ;;  %v6103_v26 = vld [vmem:[#allocation9_spill] sm:$0xff] }
 0x4f5   :  { %v4464_v30 = vpop.eup %4463  ;;  %3259 = vst [vmem:[%s6033_s9 + $0x140] sm:$0xff] %v3172_v3 }
 0x4f6   :  { %v4466_v61 = vpop.eup %4465  ;;  %v3178_v25 = vmul.f32 %v4464_v30, %v5689_v46  ;;  %v3062_v8 = vpop.xlane.xlu1 %3061 }
 0x4f7   :  { %v3176_v7 = vmul.f32 %v4466_v61, %v5691_v11  ;;  %4475 = vrcp.f32 %v3062_v8  ;;  %v3060_v38 = vpop.xlane.xlu0 %3059 }
 0x4f8   :  { %3262 = vst [vmem:[%s6033_s9 + $0x158] sm:$0xff] %v3178_v25  ;;  %4477 = vrcp.f32 %v3060_v38  ;;  %v6104_v25 = vld [vmem:[#allocation10_spill] sm:$0xff] }
 0x4f9   :  { %v4468_v37 = vpop.eup %4467  ;;  %3261 = vst [vmem:[%s6033_s9 + $0x150] sm:$0xff] %v3176_v7  ;;  %v6105_v7 = vld [vmem:[#allocation11_spill] sm:$0xff] }
 0x4fa   :  { %v4470_v56 = vpop.eup %4469  ;;  %v3182_v51 = vmul.f32 %v4468_v37, %v5697_v58  ;;  %v3066_v1 = vpop.xlane.xlu1 %3065 }
 0x4fb   :  { %v3180_v46 = vmul.f32 %v4470_v56, %v5699_v23  ;;  %4479 = vrcp.f32 %v3066_v1  ;;  %v3064_v11 = vpop.xlane.xlu0 %3063 }
 0x4fc   :  { %3264 = vst [vmem:[%s6033_s9 + $0x168] sm:$0xff] %v3182_v51  ;;  %4481 = vrcp.f32 %v3064_v11 }
 0x4fd   :  { %v4472_v33 = vpop.eup %4471  ;;  %3263 = vst [vmem:[%s6033_s9 + $0x160] sm:$0xff] %v3180_v46 }
 0x4fe   :  { %v4474_v35 = vpop.eup %4473  ;;  %v3186_v62 = vmul.f32 %v4472_v33, %v5705_v6  ;;  %v3070_v4 = vpop.xlane.xlu1 %3069  ;;  %v6097_v6 = vld [vmem:[#allocation3_spill] sm:$0xff] }
 0x4ff   :  { %v3184_v58 = vmul.f32 %v4474_v35, %v5707_v40  ;;  %4483 = vrcp.f32 %v3070_v4  ;;  %v3068_v23 = vpop.xlane.xlu0 %3067 }
 0x500   :  { %3266 = vst [vmem:[%s6033_s9 + $0x178] sm:$0xff] %v3186_v62  ;;  %4485 = vrcp.f32 %v3068_v23 }
 0x501   :  { %v4476_v41 = vpop.eup %4475  ;;  %3265 = vst [vmem:[%s6033_s9 + $0x170] sm:$0xff] %v3184_v58 }
 0x502   :  { %v4478_v5 = vpop.eup %4477  ;;  %v3190_v13 = vmul.f32 %v4476_v41, %v6096_v60  ;;  %v3074_v39 = vpop.xlane.xlu1 %3073 }
 0x503   :  { %v3188_v17 = vmul.f32 %v4478_v5, %v6097_v6  ;;  %4487 = vrcp.f32 %v3074_v39  ;;  %v3072_v40 = vpop.xlane.xlu0 %3071 }
 0x504   :  { %3268 = vst [vmem:[%s6033_s9 + $0x188] sm:$0xff] %v3190_v13  ;;  %4489 = vrcp.f32 %v3072_v40 }
 0x505   :  { %v4480_v47 = vpop.eup %4479  ;;  %3267 = vst [vmem:[%s6033_s9 + $0x180] sm:$0xff] %v3188_v17 }
 0x506   :  { %v4482_v9 = vpop.eup %4481  ;;  %v3194_v21 = vmul.f32 %v4480_v47, %v6098_v15  ;;  %v3078_v31 = vpop.xlane.xlu1 %3077 }
 0x507   :  { %v3192_v34 = vmul.f32 %v4482_v9, %v6099_v44  ;;  %4491 = vrcp.f32 %v3078_v31  ;;  %v3076_v14 = vpop.xlane.xlu0 %3075 }
 0x508   :  { %3270 = vst [vmem:[%s6033_s9 + $0x198] sm:$0xff] %v3194_v21  ;;  %4493 = vrcp.f32 %v3076_v14 }
 0x509   :  { %v4484_v50 = vpop.eup %4483  ;;  %3269 = vst [vmem:[%s6033_s9 + $0x190] sm:$0xff] %v3192_v34 }
 0x50a   :  { %v4486_v24 = vpop.eup %4485  ;;  %v3198_v52 = vmul.f32 %v4484_v50, %v6100_v45  ;;  %v3082_v55 = vpop.xlane.xlu1 %3081 }
 0x50b   :  { %v3196_v18 = vmul.f32 %v4486_v24, %v5731_v42  ;;  %4495 = vrcp.f32 %v3082_v55  ;;  %v3080_v0 = vpop.xlane.xlu0 %3079 }
 0x50c   :  { %3272 = vst [vmem:[%s6033_s9 + $0x1a8] sm:$0xff] %v3198_v52  ;;  %4497 = vrcp.f32 %v3080_v0 }
 0x50d   :  { %v4488_v53 = vpop.eup %4487  ;;  %3271 = vst [vmem:[%s6033_s9 + $0x1a0] sm:$0xff] %v3196_v18 }
 0x50e   :  { %v4490_v2 = vpop.eup %4489  ;;  %v3202_v28 = vmul.f32 %v4488_v53, %v5737_v16  ;;  %v3086_v59 = vpop.xlane.xlu1 %3085 }
 0x50f   :  { %v3200_v22 = vmul.f32 %v4490_v2, %v5739_v54  ;;  %4499 = vrcp.f32 %v3086_v59  ;;  %v3084_v42 = vpop.xlane.xlu0 %3083 }
 0x510   :  { %3274 = vst [vmem:[%s6033_s9 + $0x1b8] sm:$0xff] %v3202_v28  ;;  %4501 = vrcp.f32 %v3084_v42 }
 0x511   :  { %v4492_v10 = vpop.eup %4491  ;;  %3273 = vst [vmem:[%s6033_s9 + $0x1b0] sm:$0xff] %v3200_v22 }
 0x512   :  { %v4494_v20 = vpop.eup %4493  ;;  %v3206_v43 = vmul.f32 %v4492_v10, %v5744_v32  ;;  %v3090_v57 = vpop.xlane.xlu1 %3089 }
 0x513   :  { %v3204_v16 = vmul.f32 %v4494_v20, %v5746_v19  ;;  %4503 = vrcp.f32 %v3090_v57  ;;  %v3088_v54 = vpop.xlane.xlu0 %3087 }
 0x514   :  { %3276 = vst [vmem:[%s6033_s9 + $0x1c8] sm:$0xff] %v3206_v43  ;;  %4505 = vrcp.f32 %v3088_v54 }
 0x515   :  { %v4496_v63 = vpop.eup %4495  ;;  %3275 = vst [vmem:[%s6033_s9 + $0x1c0] sm:$0xff] %v3204_v16 }
 0x516   :  { %v4498_v27 = vpop.eup %4497  ;;  %v3210_v36 = vmul.f32 %v4496_v63, %v5750_v48 }
 0x517   :  { %v3208_v32 = vmul.f32 %v4498_v27, %v6101_v49 }
 0x518   :  { %3278 = vst [vmem:[%s6033_s9 + $0x1d8] sm:$0xff] %v3210_v36 }
 0x519   :  { %v4500_v19 = vpop.eup %4499  ;;  %3277 = vst [vmem:[%s6033_s9 + $0x1d0] sm:$0xff] %v3208_v32 }
 0x51a   :  { %v4502_v12 = vpop.eup %4501  ;;  %v3214_v3 = vmul.f32 %v4500_v19, %v6102_v29 }
 0x51b   :  { %v3212_v30 = vmul.f32 %v4502_v12, %v6103_v26 }
 0x51c   :  { %3280 = vst [vmem:[%s6033_s9 + $0x1e8] sm:$0xff] %v3214_v3 }
 0x51d   :  { %v4504_v48 = vpop.eup %4503  ;;  %3279 = vst [vmem:[%s6033_s9 + $0x1e0] sm:$0xff] %v3212_v30 }
 0x51e   :  { %v4506_v61 = vpop.eup %4505  ;;  %v3218_v8 = vmul.f32 %v4504_v48, %v6104_v25 }
 0x51f   :  { %v3216_v38 = vmul.f32 %v4506_v61, %v6105_v7 }
 0x520   :  { %3282 = vst [vmem:[%s6033_s9 + $0x1f8] sm:$0xff] %v3218_v8 }
 0x521   :  { %3281 = vst [vmem:[%s6033_s9 + $0x1f0] sm:$0xff] %v3216_v38 }

</bundles_post_ra>
